<compile_context>
chip_gen: v7x
topology: tpu7x:2x2x1
jax: 0.10.0
libtpu: 0.0.40
codegen_flags: <defaults>
</compile_context>

<pallas_src>
import jax
import jax.numpy as jnp
from jax import lax
from jax.experimental import pallas as pl
from jax.experimental.pallas import tpu as pltpu

VMEM_LIMIT = 32 * 1024 * 1024  # well above the <3 MiB/step we use; safe on v5e..v7x


def _round_up(x, m):
    return ((x + m - 1) // m) * m


# ---------------------------------------------------------------------------
# Pallas kernels
# ---------------------------------------------------------------------------
def _conv_pool_kernel(w_ref, b_ref, cols_ref, o_ref):
    """Fused conv (ONE matmul) + bias + ReLU + 2x2 maxpool.

    w_ref:    (Cout, K)      flattened conv weights (K = Cin*KH*KW)
    b_ref:    (Cout, 1)      bias, broadcast along lanes
    cols_ref: (K, 4*tm)      4 pool-offset im2col slabs concatenated on lanes
    o_ref:    (Cout, tm)     pooled, activated output (lane dim = B*OH2*OW2 tile)
    """
    tm = o_ref.shape[1]
    acc = jnp.dot(w_ref[...], cols_ref[...],
                  preferred_element_type=jnp.float32)        # (Cout, 4*tm)
    # 4-way max over lane-aligned slices (tm is a multiple of 128).
    m01 = jnp.maximum(acc[:, 0 * tm:1 * tm], acc[:, 1 * tm:2 * tm])
    m23 = jnp.maximum(acc[:, 2 * tm:3 * tm], acc[:, 3 * tm:4 * tm])
    # ReLU(max_p(acc_p) + b) == maxpool(ReLU(conv + b)): bias is shared across
    # the pool window and ReLU is monotonic.
    o_ref[...] = jnp.maximum(jnp.maximum(m01, m23) + b_ref[...],
                             0.0).astype(o_ref.dtype)


def _head_kernel(cols_ref, w5_ref, b5_ref, w6_ref, b6_ref, wo_ref, bo_ref,
                 o_ref):
    """Fused c5 conv (+ReLU) + flatten + f6 (+ReLU) + output linear.

    cols_ref: (4*tb, 400)   c5 im2col rows, position-major (p outer, batch inner)
    w5_ref:   (400, 120)    c5 weights, transposed
    w6_ref:   (4, 120, 84)  f6 weights, split/permuted per spatial position
    wo_ref:   (84, 128)     output weights, transposed, zero-padded to 128 lanes
    o_ref:    (tb, 128)     logits (columns 10..127 are zero padding)
    """
    tb = o_ref.shape[0]
    # One MXU matmul for all 4 c5 spatial positions (M = 4*tb).
    a5 = jnp.maximum(
        jnp.dot(cols_ref[...], w5_ref[...],
                preferred_element_type=jnp.float32) + b5_ref[...], 0.0)
    # f6 accumulation over the 4 positions; tb is a multiple of 8 so the
    # sublane slices are aligned.
    h = jnp.dot(a5[0:tb], w6_ref[0], preferred_element_type=jnp.float32)
    for p in range(1, 4):
        h = h + jnp.dot(a5[p * tb:(p + 1) * tb], w6_ref[p],
                        preferred_element_type=jnp.float32)
    h = jnp.maximum(h + b6_ref[...], 0.0)                         # (tb, 84)
    o_ref[...] = (jnp.dot(h, wo_ref[...], preferred_element_type=jnp.float32)
                  + bo_ref[...]).astype(o_ref.dtype)


# ---------------------------------------------------------------------------
# XLA glue: im2col construction (cheap, statically shaped) + wrappers
# ---------------------------------------------------------------------------
def _pooled_im2col_wide(a, ksize, pad, tm):
    """a: (C, B, H, W) channel-major -> cols (nt, K, 4*tm), plus shape info.

    Per grid tile i, cols[i] holds the transposed im2col slabs of all 4 pool
    offsets concatenated along lanes: lane p*tm + j corresponds to conv output
    pixel (2*oh2+ph, 2*ow2+pw) for pooled column m = i*tm + j (column order
    (b, oh2, ow2)).  Row order (c, kh, kw) matches torch's weight.reshape.
    Columns beyond B*OH2*OW2 are zero padding (sliced off after the call).
    """
    C, B, H, W = a.shape
    if pad:
        a = jnp.pad(a, ((0, 0), (0, 0), (pad, pad), (pad, pad)))
    oh = H + 2 * pad - ksize + 1
    ow = W + 2 * pad - ksize + 1
    oh2, ow2 = oh // 2, ow // 2
    M = B * oh2 * ow2
    nt = -(-M // tm)
    m_pad = nt * tm
    K = C * ksize * ksize
    groups = []
    for ph in range(2):
        for pw in range(2):
            slabs = []
            for kh in range(ksize):
                for kw in range(ksize):
                    s = a[:, :, ph + kh::2, pw + kw::2][:, :, :oh2, :ow2]
                    slabs.append(s.reshape(C, M))
            g = jnp.stack(slabs, axis=1).reshape(K, M)
            if m_pad > M:
                g = jnp.pad(g, ((0, 0), (0, m_pad - M)))
            groups.append(g.reshape(K, nt, tm))
    cols = jnp.stack(groups, axis=0)              # (4, K, nt, tm)
    cols = jnp.transpose(cols, (2, 1, 0, 3))      # (nt, K, 4, tm)
    cols = cols.reshape(nt, K, 4 * tm)
    return cols, oh2, ow2, M, nt


def conv_relu_pool(a, w_mat, b_col, *, ksize, padding):
    """a: (Cin, B, H, W) -> (Cout, B, H', W') pooled, activated (channel-major)."""
    cout, K = w_mat.shape
    C, B, H, W = a.shape
    oh2 = (H + 2 * padding - ksize + 1) // 2
    ow2 = (W + 2 * padding - ksize + 1) // 2
    M = B * oh2 * ow2
    # Bounded, 128-aligned lane tile (lane-dense stores, VMEM-safe on v7x/v6e/v5e).
    tm = min(512, _round_up(M, 128))
    cols, oh2, ow2, M, nt = _pooled_im2col_wide(a, ksize, padding, tm)
    m_pad = nt * tm

    out = pl.pallas_call(
        _conv_pool_kernel,
        out_shape=jax.ShapeDtypeStruct((cout, m_pad), jnp.float32),
        grid=(nt,),
        in_specs=[
            pl.BlockSpec((cout, K), lambda i: (0, 0)),
            pl.BlockSpec((cout, 1), lambda i: (0, 0)),
            pl.BlockSpec((None, K, 4 * tm), lambda i: (i, 0, 0)),
        ],
        out_specs=pl.BlockSpec((cout, tm), lambda i: (0, i)),
        compiler_params=pltpu.CompilerParams(
            dimension_semantics=("parallel",),
            vmem_limit_bytes=VMEM_LIMIT),
        cost_estimate=pl.CostEstimate(
            flops=2 * cout * K * 4 * m_pad,
            transcendentals=0,
            bytes_accessed=4 * (cout * K + cout + 4 * K * m_pad + cout * m_pad)),
    )(w_mat, b_col, cols)
    return out[:, :M].reshape(cout, B, oh2, ow2)


def head(a, p):
    """a: (16, B, 6, 6) channel-major -> logits (B, 10) via one fused kernel."""
    C, B, H, W = a.shape
    ksize = 5
    K = C * ksize * ksize                                       # 400
    cols = []
    for hh in range(2):            # spatial position index pos = hh*2 + ww
        for ww in range(2):
            s = a[:, :, hh:hh + ksize, ww:ww + ksize]           # (16, B, 5, 5)
            cols.append(jnp.transpose(s, (1, 0, 2, 3)).reshape(B, K))
    cols = jnp.stack(cols, axis=0)                              # (4, B, 400)

    tb = min(128, _round_up(B, 8))
    b_pad = _round_up(B, tb)
    nb = b_pad // tb
    if b_pad > B:
        cols = jnp.pad(cols, ((0, 0), (0, b_pad - B), (0, 0)))
    # Per-tile layout (nb, 4*tb, 400): the 4 positions are stacked along
    # sublanes so the kernel runs ONE (4*tb, 400) @ (400, 120) c5 matmul.
    cols = cols.reshape(4, nb, tb, K).transpose(1, 0, 2, 3).reshape(nb, 4 * tb, K)

    out = pl.pallas_call(
        _head_kernel,
        out_shape=jax.ShapeDtypeStruct((b_pad, 128), jnp.float32),
        grid=(nb,),
        in_specs=[
            pl.BlockSpec((None, 4 * tb, K), lambda i: (i, 0, 0)),
            pl.BlockSpec((K, 120), lambda i: (0, 0)),
            pl.BlockSpec((1, 120), lambda i: (0, 0)),
            pl.BlockSpec((4, 120, 84), lambda i: (0, 0, 0)),
            pl.BlockSpec((1, 84), lambda i: (0, 0)),
            pl.BlockSpec((84, 128), lambda i: (0, 0)),
            pl.BlockSpec((1, 128), lambda i: (0, 0)),
        ],
        out_specs=pl.BlockSpec((tb, 128), lambda i: (i, 0)),
        compiler_params=pltpu.CompilerParams(
            dimension_semantics=("parallel",),
            vmem_limit_bytes=VMEM_LIMIT),
        cost_estimate=pl.CostEstimate(
            flops=2 * (4 * b_pad * K * 120 + 4 * b_pad * 120 * 84
                       + b_pad * 84 * 128),
            transcendentals=0,
            bytes_accessed=4 * (4 * b_pad * K + K * 120 + 120 + 4 * 120 * 84
                                + 84 + 84 * 128 + 128 + b_pad * 128)),
    )(cols, p["c5_wt"], p["c5_b"], p["f6_wt"], p["f6_b"],
      p["out_wt"], p["out_b"])
    return out[:B, :10]


# ---------------------------------------------------------------------------
# Parameters: deterministic torch-style init + one-time kernel-layout prep
# ---------------------------------------------------------------------------
def init_params(key):
    ks = jax.random.split(key, 10)

    def u(k, shape, fan_in):
        bound = 1.0 / jnp.sqrt(float(fan_in))
        return jax.random.uniform(k, shape, jnp.float32, -bound, bound)

    return {
        "c1_w": u(ks[0], (6, 3, 5, 5), 3 * 25),
        "c1_b": u(ks[1], (6,), 3 * 25),
        "c3_w": u(ks[2], (16, 6, 5, 5), 6 * 25),
        "c3_b": u(ks[3], (16,), 6 * 25),
        "c5_w": u(ks[4], (120, 16, 5, 5), 16 * 25),
        "c5_b": u(ks[5], (120,), 16 * 25),
        "f6_w": u(ks[6], (84, 480), 480),
        "f6_b": u(ks[7], (84,), 480),
        "out_w": u(ks[8], (10, 84), 84),
        "out_b": u(ks[9], (10,), 84),
    }


def prepare_params(tp):
    """One-time reshape/transpose/permute/pad of torch-layout params."""
    # torch flatten index = c*4 + h*2 + w ; split f6 columns by spatial pos p.
    f6_wt = jnp.stack([tp["f6_w"][:, p::4].T for p in range(4)], axis=0)
    # Output linear padded to 128 lanes for a lane-dense final store.
    out_wt = jnp.pad(tp["out_w"].T, ((0, 0), (0, 128 - 10)))     # (84, 128)
    out_b = jnp.pad(tp["out_b"].reshape(1, 10), ((0, 0), (0, 128 - 10)))
    return {
        "c1_w": tp["c1_w"].reshape(6, 75),
        "c1_b": tp["c1_b"].reshape(6, 1),
        "c3_w": tp["c3_w"].reshape(16, 150),
        "c3_b": tp["c3_b"].reshape(16, 1),
        "c5_wt": tp["c5_w"].reshape(120, 400).T,                 # (400, 120)
        "c5_b": tp["c5_b"].reshape(1, 120),
        "f6_wt": f6_wt,                                          # (4, 120, 84)
        "f6_b": tp["f6_b"].reshape(1, 84),
        "out_wt": out_wt,                                        # (84, 128)
        "out_b": out_b,                                          # (1, 128)
    }


def lenet_forward(p, x):
    # x: (B, 3, 32, 32) NCHW  (32x32 spatial required by the 480-d flatten)
    a = jnp.transpose(x, (1, 0, 2, 3))                               # (3, B, 32, 32)
    a = conv_relu_pool(a, p["c1_w"], p["c1_b"], ksize=5, padding=2)  # (6, B, 16, 16)
    a = conv_relu_pool(a, p["c3_w"], p["c3_b"], ksize=5, padding=0)  # (16, B, 6, 6)
    return head(a, p)                                                # (B, 10)


# ---------------------------------------------------------------------------
# Pure-XLA reference (HIGHEST precision) for self-checking
# ---------------------------------------------------------------------------
def _lenet_reference(tp, x):
    hp = lax.Precision.HIGHEST

    def conv(inp, w, b, pad):
        y = lax.conv_general_dilated(
            inp, w, window_strides=(1, 1), padding=[(pad, pad), (pad, pad)],
            dimension_numbers=("NCHW", "OIHW", "NCHW"), precision=hp)
        return y + b.reshape(1, -1, 1, 1)

    def pool(t):
        return jnp.maximum(
            jnp.maximum(t[:, :, 0::2, 0::2], t[:, :, 0::2, 1::2]),
            jnp.maximum(t[:, :, 1::2, 0::2], t[:, :, 1::2, 1::2]))

    a = pool(jax.nn.relu(conv(x, tp["c1_w"], tp["c1_b"], 2)))
    a = pool(jax.nn.relu(conv(a, tp["c3_w"], tp["c3_b"], 0)))
    a = jax.nn.relu(conv(a, tp["c5_w"], tp["c5_b"], 0))
    a = a.reshape(a.shape[0], -1)                      # torch.Flatten (c,h,w)
    a = jax.nn.relu(jnp.dot(a, tp["f6_w"].T, precision=hp) + tp["f6_b"])
    return jnp.dot(a, tp["out_w"].T, precision=hp) + tp["out_b"]


if __name__ == "__main__":
    key = jax.random.PRNGKey(0)
    pkey, xkey = jax.random.split(key)
    torch_params = init_params(pkey)
    params = prepare_params(torch_params)
    x = jax.random.normal(xkey, (2, 3, 32, 32), jnp.float32)

    out = jax.jit(lenet_forward)(params, x)
    out = jax.block_until_ready(out)
    assert out.shape == (2, 10) and out.dtype == jnp.float32

    ref = _lenet_reference(torch_params, x)
    err = float(jnp.max(jnp.abs(out - ref)))
    assert err < 1e-2, f"Pallas forward mismatch vs XLA reference: {err}"
    print("KERNEL_OK")
</pallas_src>

<mosaic_0001>
module attributes {stable_mosaic.version = 11 : i64} {
  func.func @_conv_pool_kernel(%arg0: i32, %arg1: memref<6x75xf32, #tpu.memory_space<vmem>>, %arg2: memref<6x1xf32, #tpu.memory_space<vmem>>, %arg3: memref<1x75x2048xf32, #tpu.memory_space<vmem>>, %arg4: memref<6x512xf32, #tpu.memory_space<vmem>>) attributes {dimension_semantics = [#tpu.dimension_semantics<parallel>], iteration_bounds = array<i64: 1>, scalar_prefetch = 0 : i64, scratch_operands = 0 : i64, tpu.core_type = #tpu.core_type<tc>, window_params = [{pipeline_mode = #tpu.pipeline_mode<synchronous>, transform_indices = @transform_0, window_bounds = array<i64: 6, 75>}, {pipeline_mode = #tpu.pipeline_mode<synchronous>, transform_indices = @transform_1, window_bounds = array<i64: 6, 1>}, {transform_indices = @transform_2, window_bounds = array<i64: 1, 75, 2048>}, {transform_indices = @transform_3, window_bounds = array<i64: 6, 512>}]} {
    %c0 = arith.constant 0 : index
    %c0_0 = arith.constant 0 : index
    %0 = vector.load %arg1[%c0, %c0_0] : memref<6x75xf32, #tpu.memory_space<vmem>>, vector<6x75xf32>
    %c0_1 = arith.constant 0 : index
    %c0_2 = arith.constant 0 : index
    %c0_3 = arith.constant 0 : index
    %1 = vector.load %arg3[%c0_1, %c0_2, %c0_3] : memref<1x75x2048xf32, #tpu.memory_space<vmem>>, vector<1x75x2048xf32>
    %2 = vector.shape_cast %1 : vector<1x75x2048xf32> to vector<75x2048xf32>
    %cst = arith.constant dense<0.000000e+00> : vector<6x2048xf32>
    %3 = tpu.matmul %0, %2, %cst {dimension_numbers = #tpu.dot_dimension_numbers<[1], [0], [0], [1], [0, 0, 1, 1], [], []>} : vector<6x75xf32>, vector<75x2048xf32>, vector<6x2048xf32> -> vector<6x2048xf32>
    %4 = vector.extract_strided_slice %3 {offsets = [0, 0], sizes = [6, 512], strides = [1, 1]} : vector<6x2048xf32> to vector<6x512xf32>
    %5 = vector.extract_strided_slice %3 {offsets = [0, 512], sizes = [6, 512], strides = [1, 1]} : vector<6x2048xf32> to vector<6x512xf32>
    %6 = arith.maximumf %4, %5 : vector<6x512xf32>
    %7 = vector.extract_strided_slice %3 {offsets = [0, 1024], sizes = [6, 512], strides = [1, 1]} : vector<6x2048xf32> to vector<6x512xf32>
    %8 = vector.extract_strided_slice %3 {offsets = [0, 1536], sizes = [6, 512], strides = [1, 1]} : vector<6x2048xf32> to vector<6x512xf32>
    %9 = arith.maximumf %7, %8 : vector<6x512xf32>
    %10 = arith.maximumf %6, %9 : vector<6x512xf32>
    %c0_4 = arith.constant 0 : index
    %c0_5 = arith.constant 0 : index
    %11 = vector.load %arg2[%c0_4, %c0_5] : memref<6x1xf32, #tpu.memory_space<vmem>>, vector<6x1xf32>
    %12 = vector.broadcast %11 : vector<6x1xf32> to vector<6x512xf32>
    %13 = arith.addf %10, %12 : vector<6x512xf32>
    %cst_6 = arith.constant 0.000000e+00 : f32
    %14 = vector.broadcast %cst_6 : f32 to vector<6x512xf32>
    %15 = arith.maximumf %13, %14 : vector<6x512xf32>
    %c0_7 = arith.constant 0 : index
    %c0_8 = arith.constant 0 : index
    %16 = vector.load %arg4[%c0_7, %c0_8] : memref<6x512xf32, #tpu.memory_space<vmem>>, vector<6x512xf32>
    tpu.vector_store %arg4[%c0_7, %c0_8], %15 {strides = array<i32>} : memref<6x512xf32, #tpu.memory_space<vmem>>, vector<6x512xf32>,
    return
  }
  func.func @transform_0(%arg0: i32) -> (i32, i32) {
    %c0_i32 = arith.constant 0 : i32
    %c0_i32_0 = arith.constant 0 : i32
    %c0_i32_1 = arith.constant 0 : i32
    return %c0_i32, %c0_i32_0 : i32, i32
  }
  func.func @transform_1(%arg0: i32) -> (i32, i32) {
    %c0_i32 = arith.constant 0 : i32
    %c0_i32_0 = arith.constant 0 : i32
    %c0_i32_1 = arith.constant 0 : i32
    return %c0_i32, %c0_i32_0 : i32, i32
  }
  func.func @transform_2(%arg0: i32) -> (i32, i32, i32) {
    %c0_i32 = arith.constant 0 : i32
    %c0_i32_0 = arith.constant 0 : i32
    %c0_i32_1 = arith.constant 0 : i32
    return %arg0, %c0_i32, %c0_i32_0 : i32, i32, i32
  }
  func.func @transform_3(%arg0: i32) -> (i32, i32) {
    %c0_i32 = arith.constant 0 : i32
    %c0_i32_0 = arith.constant 0 : i32
    return %c0_i32, %arg0 : i32, i32
  }
}

module attributes {stable_mosaic.version = 11 : i64} {
  func.func @_conv_pool_kernel(%arg0: i32, %arg1: memref<16x150xf32, #tpu.memory_space<vmem>>, %arg2: memref<16x1xf32, #tpu.memory_space<vmem>>, %arg3: memref<1x150x512xf32, #tpu.memory_space<vmem>>, %arg4: memref<16x128xf32, #tpu.memory_space<vmem>>) attributes {dimension_semantics = [#tpu.dimension_semantics<parallel>], iteration_bounds = array<i64: 1>, scalar_prefetch = 0 : i64, scratch_operands = 0 : i64, tpu.core_type = #tpu.core_type<tc>, window_params = [{pipeline_mode = #tpu.pipeline_mode<synchronous>, transform_indices = @transform_0, window_bounds = array<i64: 16, 150>}, {pipeline_mode = #tpu.pipeline_mode<synchronous>, transform_indices = @transform_1, window_bounds = array<i64: 16, 1>}, {transform_indices = @transform_2, window_bounds = array<i64: 1, 150, 512>}, {transform_indices = @transform_3, window_bounds = array<i64: 16, 128>}]} {
    %c0 = arith.constant 0 : index
    %c0_0 = arith.constant 0 : index
    %0 = vector.load %arg1[%c0, %c0_0] : memref<16x150xf32, #tpu.memory_space<vmem>>, vector<16x150xf32>
    %c0_1 = arith.constant 0 : index
    %c0_2 = arith.constant 0 : index
    %c0_3 = arith.constant 0 : index
    %1 = vector.load %arg3[%c0_1, %c0_2, %c0_3] : memref<1x150x512xf32, #tpu.memory_space<vmem>>, vector<1x150x512xf32>
    %2 = vector.shape_cast %1 : vector<1x150x512xf32> to vector<150x512xf32>
    %cst = arith.constant dense<0.000000e+00> : vector<16x512xf32>
    %3 = tpu.matmul %0, %2, %cst {dimension_numbers = #tpu.dot_dimension_numbers<[1], [0], [0], [1], [0, 0, 1, 1], [], []>} : vector<16x150xf32>, vector<150x512xf32>, vector<16x512xf32> -> vector<16x512xf32>
    %4 = vector.extract_strided_slice %3 {offsets = [0, 0], sizes = [16, 128], strides = [1, 1]} : vector<16x512xf32> to vector<16x128xf32>
    %5 = vector.extract_strided_slice %3 {offsets = [0, 128], sizes = [16, 128], strides = [1, 1]} : vector<16x512xf32> to vector<16x128xf32>
    %6 = arith.maximumf %4, %5 : vector<16x128xf32>
    %7 = vector.extract_strided_slice %3 {offsets = [0, 256], sizes = [16, 128], strides = [1, 1]} : vector<16x512xf32> to vector<16x128xf32>
    %8 = vector.extract_strided_slice %3 {offsets = [0, 384], sizes = [16, 128], strides = [1, 1]} : vector<16x512xf32> to vector<16x128xf32>
    %9 = arith.maximumf %7, %8 : vector<16x128xf32>
    %10 = arith.maximumf %6, %9 : vector<16x128xf32>
    %c0_4 = arith.constant 0 : index
    %c0_5 = arith.constant 0 : index
    %11 = vector.load %arg2[%c0_4, %c0_5] : memref<16x1xf32, #tpu.memory_space<vmem>>, vector<16x1xf32>
    %12 = vector.broadcast %11 : vector<16x1xf32> to vector<16x128xf32>
    %13 = arith.addf %10, %12 : vector<16x128xf32>
    %cst_6 = arith.constant 0.000000e+00 : f32
    %14 = vector.broadcast %cst_6 : f32 to vector<16x128xf32>
    %15 = arith.maximumf %13, %14 : vector<16x128xf32>
    %c0_7 = arith.constant 0 : index
    %c0_8 = arith.constant 0 : index
    %16 = vector.load %arg4[%c0_7, %c0_8] : memref<16x128xf32, #tpu.memory_space<vmem>>, vector<16x128xf32>
    tpu.vector_store %arg4[%c0_7, %c0_8], %15 {strides = array<i32>} : memref<16x128xf32, #tpu.memory_space<vmem>>, vector<16x128xf32>,
    return
  }
  func.func @transform_0(%arg0: i32) -> (i32, i32) {
    %c0_i32 = arith.constant 0 : i32
    %c0_i32_0 = arith.constant 0 : i32
    %c0_i32_1 = arith.constant 0 : i32
    return %c0_i32, %c0_i32_0 : i32, i32
  }
  func.func @transform_1(%arg0: i32) -> (i32, i32) {
    %c0_i32 = arith.constant 0 : i32
    %c0_i32_0 = arith.constant 0 : i32
    %c0_i32_1 = arith.constant 0 : i32
    return %c0_i32, %c0_i32_0 : i32, i32
  }
  func.func @transform_2(%arg0: i32) -> (i32, i32, i32) {
    %c0_i32 = arith.constant 0 : i32
    %c0_i32_0 = arith.constant 0 : i32
    %c0_i32_1 = arith.constant 0 : i32
    return %arg0, %c0_i32, %c0_i32_0 : i32, i32, i32
  }
  func.func @transform_3(%arg0: i32) -> (i32, i32) {
    %c0_i32 = arith.constant 0 : i32
    %c0_i32_0 = arith.constant 0 : i32
    return %c0_i32, %arg0 : i32, i32
  }
}

module attributes {stable_mosaic.version = 11 : i64} {
  func.func @_head_kernel(%arg0: i32, %arg1: memref<1x32x400xf32, #tpu.memory_space<vmem>>, %arg2: memref<400x120xf32, #tpu.memory_space<vmem>>, %arg3: memref<1x120xf32, #tpu.memory_space<vmem>>, %arg4: memref<4x120x84xf32, #tpu.memory_space<vmem>>, %arg5: memref<1x84xf32, #tpu.memory_space<vmem>>, %arg6: memref<84x128xf32, #tpu.memory_space<vmem>>, %arg7: memref<1x128xf32, #tpu.memory_space<vmem>>, %arg8: memref<8x128xf32, #tpu.memory_space<vmem>>) attributes {dimension_semantics = [#tpu.dimension_semantics<parallel>], iteration_bounds = array<i64: 1>, scalar_prefetch = 0 : i64, scratch_operands = 0 : i64, tpu.core_type = #tpu.core_type<tc>, window_params = [{transform_indices = @transform_0, window_bounds = array<i64: 1, 32, 400>}, {pipeline_mode = #tpu.pipeline_mode<synchronous>, transform_indices = @transform_1, window_bounds = array<i64: 400, 120>}, {pipeline_mode = #tpu.pipeline_mode<synchronous>, transform_indices = @transform_2, window_bounds = array<i64: 1, 120>}, {pipeline_mode = #tpu.pipeline_mode<synchronous>, transform_indices = @transform_3, window_bounds = array<i64: 4, 120, 84>}, {pipeline_mode = #tpu.pipeline_mode<synchronous>, transform_indices = @transform_4, window_bounds = array<i64: 1, 84>}, {pipeline_mode = #tpu.pipeline_mode<synchronous>, transform_indices = @transform_5, window_bounds = array<i64: 84, 128>}, {pipeline_mode = #tpu.pipeline_mode<synchronous>, transform_indices = @transform_6, window_bounds = array<i64: 1, 128>}, {transform_indices = @transform_7, window_bounds = array<i64: 8, 128>}]} {
    %c0 = arith.constant 0 : index
    %c0_0 = arith.constant 0 : index
    %c0_1 = arith.constant 0 : index
    %0 = vector.load %arg1[%c0, %c0_0, %c0_1] : memref<1x32x400xf32, #tpu.memory_space<vmem>>, vector<1x32x400xf32>
    %1 = vector.shape_cast %0 : vector<1x32x400xf32> to vector<32x400xf32>
    %c0_2 = arith.constant 0 : index
    %c0_3 = arith.constant 0 : index
    %2 = vector.load %arg2[%c0_2, %c0_3] : memref<400x120xf32, #tpu.memory_space<vmem>>, vector<400x120xf32>
    %cst = arith.constant dense<0.000000e+00> : vector<32x120xf32>
    %3 = tpu.matmul %1, %2, %cst {dimension_numbers = #tpu.dot_dimension_numbers<[1], [0], [0], [1], [0, 0, 1, 1], [], []>} : vector<32x400xf32>, vector<400x120xf32>, vector<32x120xf32> -> vector<32x120xf32>
    %c0_4 = arith.constant 0 : index
    %c0_5 = arith.constant 0 : index
    %4 = vector.load %arg3[%c0_4, %c0_5] : memref<1x120xf32, #tpu.memory_space<vmem>>, vector<1x120xf32>
    %5 = vector.broadcast %4 : vector<1x120xf32> to vector<32x120xf32>
    %6 = arith.addf %3, %5 : vector<32x120xf32>
    %cst_6 = arith.constant 0.000000e+00 : f32
    %7 = vector.broadcast %cst_6 : f32 to vector<32x120xf32>
    %8 = arith.maximumf %6, %7 : vector<32x120xf32>
    %9 = vector.extract_strided_slice %8 {offsets = [0, 0], sizes = [8, 120], strides = [1, 1]} : vector<32x120xf32> to vector<8x120xf32>
    %c0_7 = arith.constant 0 : index
    %c0_8 = arith.constant 0 : index
    %c0_9 = arith.constant 0 : index
    %10 = vector.load %arg4[%c0_7, %c0_8, %c0_9] : memref<4x120x84xf32, #tpu.memory_space<vmem>>, vector<1x120x84xf32>
    %11 = vector.shape_cast %10 : vector<1x120x84xf32> to vector<120x84xf32>
    %cst_10 = arith.constant dense<0.000000e+00> : vector<8x84xf32>
    %12 = tpu.matmul %9, %11, %cst_10 {dimension_numbers = #tpu.dot_dimension_numbers<[1], [0], [0], [1], [0, 0, 1, 1], [], []>} : vector<8x120xf32>, vector<120x84xf32>, vector<8x84xf32> -> vector<8x84xf32>
    %13 = vector.extract_strided_slice %8 {offsets = [8, 0], sizes = [8, 120], strides = [1, 1]} : vector<32x120xf32> to vector<8x120xf32>
    %c1 = arith.constant 1 : index
    %c0_11 = arith.constant 0 : index
    %c0_12 = arith.constant 0 : index
    %14 = vector.load %arg4[%c1, %c0_11, %c0_12] : memref<4x120x84xf32, #tpu.memory_space<vmem>>, vector<1x120x84xf32>
    %15 = vector.shape_cast %14 : vector<1x120x84xf32> to vector<120x84xf32>
    %cst_13 = arith.constant dense<0.000000e+00> : vector<8x84xf32>
    %16 = tpu.matmul %13, %15, %cst_13 {dimension_numbers = #tpu.dot_dimension_numbers<[1], [0], [0], [1], [0, 0, 1, 1], [], []>} : vector<8x120xf32>, vector<120x84xf32>, vector<8x84xf32> -> vector<8x84xf32>
    %17 = arith.addf %12, %16 : vector<8x84xf32>
    %18 = vector.extract_strided_slice %8 {offsets = [16, 0], sizes = [8, 120], strides = [1, 1]} : vector<32x120xf32> to vector<8x120xf32>
    %c2 = arith.constant 2 : index
    %c0_14 = arith.constant 0 : index
    %c0_15 = arith.constant 0 : index
    %19 = vector.load %arg4[%c2, %c0_14, %c0_15] : memref<4x120x84xf32, #tpu.memory_space<vmem>>, vector<1x120x84xf32>
    %20 = vector.shape_cast %19 : vector<1x120x84xf32> to vector<120x84xf32>
    %cst_16 = arith.constant dense<0.000000e+00> : vector<8x84xf32>
    %21 = tpu.matmul %18, %20, %cst_16 {dimension_numbers = #tpu.dot_dimension_numbers<[1], [0], [0], [1], [0, 0, 1, 1], [], []>} : vector<8x120xf32>, vector<120x84xf32>, vector<8x84xf32> -> vector<8x84xf32>
    %22 = arith.addf %17, %21 : vector<8x84xf32>
    %23 = vector.extract_strided_slice %8 {offsets = [24, 0], sizes = [8, 120], strides = [1, 1]} : vector<32x120xf32> to vector<8x120xf32>
    %c3 = arith.constant 3 : index
    %c0_17 = arith.constant 0 : index
    %c0_18 = arith.constant 0 : index
    %24 = vector.load %arg4[%c3, %c0_17, %c0_18] : memref<4x120x84xf32, #tpu.memory_space<vmem>>, vector<1x120x84xf32>
    %25 = vector.shape_cast %24 : vector<1x120x84xf32> to vector<120x84xf32>
    %cst_19 = arith.constant dense<0.000000e+00> : vector<8x84xf32>
    %26 = tpu.matmul %23, %25, %cst_19 {dimension_numbers = #tpu.dot_dimension_numbers<[1], [0], [0], [1], [0, 0, 1, 1], [], []>} : vector<8x120xf32>, vector<120x84xf32>, vector<8x84xf32> -> vector<8x84xf32>
    %27 = arith.addf %22, %26 : vector<8x84xf32>
    %c0_20 = arith.constant 0 : index
    %c0_21 = arith.constant 0 : index
    %28 = vector.load %arg5[%c0_20, %c0_21] : memref<1x84xf32, #tpu.memory_space<vmem>>, vector<1x84xf32>
    %29 = vector.broadcast %28 : vector<1x84xf32> to vector<8x84xf32>
    %30 = arith.addf %27, %29 : vector<8x84xf32>
    %cst_22 = arith.constant 0.000000e+00 : f32
    %31 = vector.broadcast %cst_22 : f32 to vector<8x84xf32>
    %32 = arith.maximumf %30, %31 : vector<8x84xf32>
    %c0_23 = arith.constant 0 : index
    %c0_24 = arith.constant 0 : index
    %33 = vector.load %arg6[%c0_23, %c0_24] : memref<84x128xf32, #tpu.memory_space<vmem>>, vector<84x128xf32>
    %cst_25 = arith.constant dense<0.000000e+00> : vector<8x128xf32>
    %34 = tpu.matmul %32, %33, %cst_25 {dimension_numbers = #tpu.dot_dimension_numbers<[1], [0], [0], [1], [0, 0, 1, 1], [], []>} : vector<8x84xf32>, vector<84x128xf32>, vector<8x128xf32> -> vector<8x128xf32>
    %c0_26 = arith.constant 0 : index
    %c0_27 = arith.constant 0 : index
    %35 = vector.load %arg7[%c0_26, %c0_27] : memref<1x128xf32, #tpu.memory_space<vmem>>, vector<1x128xf32>
    %36 = vector.broadcast %35 : vector<1x128xf32> to vector<8x128xf32>
    %37 = arith.addf %34, %36 : vector<8x128xf32>
    %c0_28 = arith.constant 0 : index
    %c0_29 = arith.constant 0 : index
    %38 = vector.load %arg8[%c0_28, %c0_29] : memref<8x128xf32, #tpu.memory_space<vmem>>, vector<8x128xf32>
    tpu.vector_store %arg8[%c0_28, %c0_29], %37 {strides = array<i32>} : memref<8x128xf32, #tpu.memory_space<vmem>>, vector<8x128xf32>,
    return
  }
  func.func @transform_0(%arg0: i32) -> (i32, i32, i32) {
    %c0_i32 = arith.constant 0 : i32
    %c0_i32_0 = arith.constant 0 : i32
    %c0_i32_1 = arith.constant 0 : i32
    return %arg0, %c0_i32, %c0_i32_0 : i32, i32, i32
  }
  func.func @transform_1(%arg0: i32) -> (i32, i32) {
    %c0_i32 = arith.constant 0 : i32
    %c0_i32_0 = arith.constant 0 : i32
    %c0_i32_1 = arith.constant 0 : i32
    return %c0_i32, %c0_i32_0 : i32, i32
  }
  func.func @transform_2(%arg0: i32) -> (i32, i32) {
    %c0_i32 = arith.constant 0 : i32
    %c0_i32_0 = arith.constant 0 : i32
    %c0_i32_1 = arith.constant 0 : i32
    return %c0_i32, %c0_i32_0 : i32, i32
  }
  func.func @transform_3(%arg0: i32) -> (i32, i32, i32) {
    %c0_i32 = arith.constant 0 : i32
    %c0_i32_0 = arith.constant 0 : i32
    %c0_i32_1 = arith.constant 0 : i32
    %c0_i32_2 = arith.constant 0 : i32
    return %c0_i32, %c0_i32_0, %c0_i32_1 : i32, i32, i32
  }
  func.func @transform_4(%arg0: i32) -> (i32, i32) {
    %c0_i32 = arith.constant 0 : i32
    %c0_i32_0 = arith.constant 0 : i32
    %c0_i32_1 = arith.constant 0 : i32
    return %c0_i32, %c0_i32_0 : i32, i32
  }
  func.func @transform_5(%arg0: i32) -> (i32, i32) {
    %c0_i32 = arith.constant 0 : i32
    %c0_i32_0 = arith.constant 0 : i32
    %c0_i32_1 = arith.constant 0 : i32
    return %c0_i32, %c0_i32_0 : i32, i32
  }
  func.func @transform_6(%arg0: i32) -> (i32, i32) {
    %c0_i32 = arith.constant 0 : i32
    %c0_i32_0 = arith.constant 0 : i32
    %c0_i32_1 = arith.constant 0 : i32
    return %c0_i32, %c0_i32_0 : i32, i32
  }
  func.func @transform_7(%arg0: i32) -> (i32, i32) {
    %c0_i32 = arith.constant 0 : i32
    %c0_i32_0 = arith.constant 0 : i32
    return %arg0, %c0_i32 : i32, i32
  }
}

</mosaic_0001>

<bundles_post_ra>
// kernel: lenet_forward.3
= control target key start
LH: loop header
LB: loop body
LE: loop exit
PB: predicated region body
PF: predicated region fallthrough
CT: control target
= control target key end

     0   :  { %v1034_v3 = vmov 0.0   ;;  %v1035_v8 = vmov 0   ;;  %vm179_vm0 = vcmask 1042432   ;;  %vm1036_vm1 = vmmov 1   ;;  %s1617_s2 = inlined_call_operand.vmem [shape: f32[1,75,2048], index: 2, kind: input, shape index: {}]   ;;  %s1618_s0 = inlined_call_operand.vmem [shape: f32[6,75], index: 0, kind: input, shape index: {}]   ;;  %s1619_s1 = inlined_call_operand.vmem [shape: f32[6,1], index: 1, kind: input, shape index: {}]   ;;  %s1620_s3 = inlined_call_operand.vmem [shape: f32[6,512], index: 3, kind: output, shape index: {}]  }
   0x1   :  { %v16_v0 = vld [vmem:[%s1617_s2 + $0x8] sm:$0xff]  ;;  %v18_v2 = vld [vmem:[%s1617_s2 + $0x18] sm:$0xff]  ;;  %292 = vmatprep.mubr.f32.mxu0 %v1034_v3  ;;  %363 = vmatprep.mubr.f32.mxu1 %v1034_v3  ;;  %v15_v6 = vld [vmem:[%s1617_s2] sm:$0xff]  ;;  %vm175_vm3 = vcmask 613376  }
   0x2   :  { %v32_v1 = vld [vmem:[%s1617_s2 + $0x88] sm:$0xff]  ;;  %v34_v5 = vld [vmem:[%s1617_s2 + $0x98] sm:$0xff]  ;;  %v31_v7 = vld [vmem:[%s1617_s2 + $0x80] sm:$0xff]  ;;  %1033 = vset.pattern.permute.xlu0 %v1035_v8 }
   0x3   :  { %v854_v4 = vpack.c.bf16 %v32_v1, %v16_v0  ;;  %v876_v9 = vpack.c.bf16 %v34_v5, %v18_v2  ;;  %v856_v10 = vpack.c.bf16 %v31_v7, %v15_v6  ;;  %v17_v11 = vld [vmem:[%s1617_s2 + $0x10] sm:$0xff]  ;;  %v48_v13 = vld [vmem:[%s1617_s2 + $0x108] sm:$0xff]  ;;  %v50_v16 = vld [vmem:[%s1617_s2 + $0x118] sm:$0xff] }
   0x4   :  { %v33_v12 = vld [vmem:[%s1617_s2 + $0x90] sm:$0xff]  ;;  %v64_v15 = vld [vmem:[%s1617_s2 + $0x188] sm:$0xff]  ;;  %v66_v17 = vld [vmem:[%s1617_s2 + $0x198] sm:$0xff] }
   0x5   :  { %855 = vmatprep.subr.bf16.mxu0 %v854_v4  ;;  %v878_v14 = vpack.c.bf16 %v33_v12, %v17_v11  ;;  %877 = vmatprep.subr.bf16.mxu1 %v876_v9  ;;  %v858_v18 = vpack.c.bf16 %v64_v15, %v48_v13  ;;  %v880_v19 = vpack.c.bf16 %v66_v17, %v50_v16  ;;  %v47_v20 = vld [vmem:[%s1617_s2 + $0x100] sm:$0xff]  ;;  %v49_v22 = vld [vmem:[%s1617_s2 + $0x110] sm:$0xff]  ;;  %v80_v25 = vld [vmem:[%s1617_s2 + $0x208] sm:$0xff] }
   0x6   :  { %857 = vmatpush1.bf16.msra.mxu0 %v856_v10  ;;  %v63_v21 = vld [vmem:[%s1617_s2 + $0x180] sm:$0xff]  ;;  %v65_v24 = vld [vmem:[%s1617_s2 + $0x190] sm:$0xff]  ;;  %v96_v26 = vld [vmem:[%s1617_s2 + $0x288] sm:$0xff] }
   0x7   :  { %879 = vmatpush1.bf16.msra.mxu1 %v878_v14  ;;  %v860_v23 = vpack.c.bf16 %v63_v21, %v47_v20  ;;  %859 = vmatprep.subr.bf16.mxu0 %v858_v18  ;;  %v882_v27 = vpack.c.bf16 %v65_v24, %v49_v22  ;;  %v862_v28 = vpack.c.bf16 %v96_v26, %v80_v25  ;;  %v82_v29 = vld [vmem:[%s1617_s2 + $0x218] sm:$0xff]  ;;  %v79_v31 = vld [vmem:[%s1617_s2 + $0x200] sm:$0xff]  ;;  %v81_v34 = vld [vmem:[%s1617_s2 + $0x210] sm:$0xff] }
   0x8   :  { %881 = vmatprep.subr.bf16.mxu1 %v880_v19  ;;  %v98_v30 = vld [vmem:[%s1617_s2 + $0x298] sm:$0xff]  ;;  %v95_v33 = vld [vmem:[%s1617_s2 + $0x280] sm:$0xff]  ;;  %v97_v35 = vld [vmem:[%s1617_s2 + $0x290] sm:$0xff] }
   0x9   :  { %v884_v32 = vpack.c.bf16 %v98_v30, %v82_v29  ;;  %v864_v36 = vpack.c.bf16 %v95_v33, %v79_v31  ;;  %v112_v37 = vld [vmem:[%s1617_s2 + $0x308] sm:$0xff]  ;;  %v114_v39 = vld [vmem:[%s1617_s2 + $0x318] sm:$0xff]  ;;  %v886_v40 = vpack.c.bf16 %v97_v35, %v81_v34  ;;  %v111_v43 = vld [vmem:[%s1617_s2 + $0x300] sm:$0xff] }
   0xa   :  { %861 = vmatpush1.bf16.msra.mxu0 %v860_v23  ;;  %v128_v38 = vld [vmem:[%s1617_s2 + $0x388] sm:$0xff]  ;;  %v130_v42 = vld [vmem:[%s1617_s2 + $0x398] sm:$0xff]  ;;  %v127_v44 = vld [vmem:[%s1617_s2 + $0x380] sm:$0xff] }
   0xb   :  { %883 = vmatpush1.bf16.msra.mxu1 %v882_v27  ;;  %863 = vmatprep.subr.bf16.mxu0 %v862_v28  ;;  %v866_v41 = vpack.c.bf16 %v128_v38, %v112_v37  ;;  %v888_v45 = vpack.c.bf16 %v130_v42, %v114_v39  ;;  %v113_v46 = vld [vmem:[%s1617_s2 + $0x310] sm:$0xff]  ;;  %v144_v48 = vld [vmem:[%s1617_s2 + $0x408] sm:$0xff]  ;;  %v146_v50 = vld [vmem:[%s1617_s2 + $0x418] sm:$0xff]  ;;  %v868_v51 = vpack.c.bf16 %v127_v44, %v111_v43 }
   0xc   :  { %885 = vmatprep.subr.bf16.mxu1 %v884_v32  ;;  %v129_v47 = vld [vmem:[%s1617_s2 + $0x390] sm:$0xff]  ;;  %v160_v49 = vld [vmem:[%s1617_s2 + $0x488] sm:$0x7]  ;;  %vm1164_vm2 = vmpackc.low %vm179_vm0, %vm1036_vm1 }
   0xd   :  { %v162_v53 = vld [vmem:[%s1617_s2 + $0x498] sm:$0x7]  ;;  %v890_v54 = vpack.c.bf16 %v129_v47, %v113_v46  ;;  %v870_v55 = vpack.c.bf16 %v160_v49, %v144_v48  ;;  %v143_v56 = vld [vmem:[%s1617_s2 + $0x400] sm:$0xff]  ;;  %v145_v58 = vld [vmem:[%s1617_s2 + $0x410] sm:$0xff] }
   0xe   :  { %865 = vmatpush1.bf16.msra.mxu0 %v864_v36  ;;  %v159_v57 = vld [vmem:[%s1617_s2 + $0x480] sm:$0x7]  ;;  %v892_v59 = vpack.c.bf16 %v162_v53, %v146_v50  ;;  %v161_v60 = vld [vmem:[%s1617_s2 + $0x490] sm:$0x7]  ;;  %v20_v61 = vld [vmem:[%s1617_s2 + $0x28] sm:$0xff] }
   0xf   :  { %887 = vmatpush1.bf16.msra.mxu1 %v886_v40  ;;  %867 = vmatprep.subr.bf16.mxu0 %v866_v41  ;;  %v36_v62 = vld [vmem:[%s1617_s2 + $0xa8] sm:$0xff]  ;;  %v22_v63 = vld [vmem:[%s1617_s2 + $0x38] sm:$0xff]  ;;  %v873_v1 = vpack.c.bf16 %v159_v57, %v143_v56  ;;  %v895_v2 = vpack.c.bf16 %v161_v60, %v145_v58  ;;  %v19_v5 = vld [vmem:[%s1617_s2 + $0x20] sm:$0xff] }
  0x10   :  { %889 = vmatprep.subr.bf16.mxu1 %v888_v45  ;;  %v38_v0 = vld [vmem:[%s1617_s2 + $0xb8] sm:$0xff]  ;;  %v898_v4 = vpack.c.bf16 %v36_v62, %v20_v61  ;;  %v35_v6 = vld [vmem:[%s1617_s2 + $0xa0] sm:$0xff]  ;;  %v21_v7 = vld [vmem:[%s1617_s2 + $0x30] sm:$0xff] }
  0x11   :  { %v920_v8 = vpack.c.bf16 %v38_v0, %v22_v63  ;;  %v37_v9 = vld [vmem:[%s1617_s2 + $0xb0] sm:$0xff]  ;;  %v52_v10 = vld [vmem:[%s1617_s2 + $0x128] sm:$0xff]  ;;  %v54_v12 = vld [vmem:[%s1617_s2 + $0x138] sm:$0xff]  ;;  %v900_v15 = vpack.c.bf16 %v35_v6, %v19_v5 }
  0x12   :  { %869 = vmatpush1.bf16.msra.mxu0 %v868_v51  ;;  %v68_v11 = vld [vmem:[%s1617_s2 + $0x1a8] sm:$0xff]  ;;  %v70_v13 = vld [vmem:[%s1617_s2 + $0x1b8] sm:$0xff]  ;;  %v1228_v14 = vld [vmem:[%s1618_s0] sm:$0x3f]  ;;  %v922_v16 = vpack.c.bf16 %v37_v9, %v21_v7 }
  0x13   :  { %891 = vmatpush1.bf16.msra.mxu1 %v890_v54  ;;  %872 = vmatprep.subr.msk.bf16.mxu0 %vm1164_vm2, %v870_v55  ;;  %v902_v17 = vpack.c.bf16 %v68_v11, %v52_v10  ;;  %v51_v18 = vld [vmem:[%s1617_s2 + $0x120] sm:$0xff]  ;;  %v53_v20 = vld [vmem:[%s1617_s2 + $0x130] sm:$0xff]  ;;  %v924_v21 = vpack.c.bf16 %v70_v13, %v54_v12  ;;  %v84_v23 = vld [vmem:[%s1617_s2 + $0x228] sm:$0xff] }
  0x14   :  { %894 = vmatprep.subr.msk.bf16.mxu1 %vm1164_vm2, %v892_v59  ;;  %v67_v19 = vld [vmem:[%s1617_s2 + $0x1a0] sm:$0xff]  ;;  %v69_v22 = vld [vmem:[%s1617_s2 + $0x1b0] sm:$0xff]  ;;  %v100_v24 = vld [vmem:[%s1617_s2 + $0x2a8] sm:$0xff] }
  0x15   :  { %v86_v25 = vld [vmem:[%s1617_s2 + $0x238] sm:$0xff]  ;;  %v904_v27 = vpack.c.bf16 %v67_v19, %v51_v18  ;;  %v926_v28 = vpack.c.bf16 %v69_v22, %v53_v20  ;;  %v906_v29 = vpack.c.bf16 %v100_v24, %v84_v23  ;;  %v83_v30 = vld [vmem:[%s1617_s2 + $0x220] sm:$0xff]  ;;  %v85_v32 = vld [vmem:[%s1617_s2 + $0x230] sm:$0xff] }
  0x16   :  { %875 = vmatpush1.bf16.msk.msra.mxu0 %vm1164_vm2, %v873_v1  ;;  %v102_v26 = vld [vmem:[%s1617_s2 + $0x2b8] sm:$0xff]  ;;  %v99_v31 = vld [vmem:[%s1617_s2 + $0x2a0] sm:$0xff]  ;;  %v101_v34 = vld [vmem:[%s1617_s2 + $0x2b0] sm:$0xff] }
  0x17   :  { %897 = vmatpush1.bf16.msk.msra.mxu1 %vm1164_vm2, %v895_v2  ;;  %899 = vmatprep.subr.bf16.mxu0 %v898_v4  ;;  %v928_v33 = vpack.c.bf16 %v102_v26, %v86_v25  ;;  %v116_v35 = vld [vmem:[%s1617_s2 + $0x328] sm:$0xff]  ;;  %v118_v37 = vld [vmem:[%s1617_s2 + $0x338] sm:$0xff]  ;;  %v908_v39 = vpack.c.bf16 %v99_v31, %v83_v30  ;;  %v930_v40 = vpack.c.bf16 %v101_v34, %v85_v32  ;;  %v115_v42 = vld [vmem:[%s1617_s2 + $0x320] sm:$0xff] }
  0x18   :  { %921 = vmatprep.subr.bf16.mxu1 %v920_v8  ;;  %v132_v36 = vld [vmem:[%s1617_s2 + $0x3a8] sm:$0xff]  ;;  %v134_v38 = vld [vmem:[%s1617_s2 + $0x3b8] sm:$0xff]  ;;  %v131_v43 = vld [vmem:[%s1617_s2 + $0x3a0] sm:$0xff] }
  0x19   :  { %832 = vmatmul.mubr.msk.f32.vlgmr.msra.gmra.mrb[0].mxu0 %vm175_vm3, %v1228_v14  ;;  %v910_v41 = vpack.c.bf16 %v132_v36, %v116_v35  ;;  %v117_v44 = vld [vmem:[%s1617_s2 + $0x330] sm:$0xff]  ;;  %v932_v45 = vpack.c.bf16 %v134_v38, %v118_v37  ;;  %v148_v47 = vld [vmem:[%s1617_s2 + $0x428] sm:$0xff]  ;;  %v150_v49 = vld [vmem:[%s1617_s2 + $0x438] sm:$0xff]  ;;  %v912_v51 = vpack.c.bf16 %v131_v43, %v115_v42 }
  0x1a   :  { %835 = vmatmul.mubr.msk.f32.vlgmr.msra.gmra.mrb[0].mxu1 %vm175_vm3, %v1228_v14  ;;  %901 = vmatpush1.bf16.msra.mxu0 %v900_v15  ;;  %v133_v46 = vld [vmem:[%s1617_s2 + $0x3b0] sm:$0xff]  ;;  %v164_v48 = vld [vmem:[%s1617_s2 + $0x4a8] sm:$0x7]  ;;  %v166_v50 = vld [vmem:[%s1617_s2 + $0x4b8] sm:$0x7] }
  0x1b   :  { %923 = vmatpush1.bf16.msra.mxu1 %v922_v16  ;;  %903 = vmatprep.subr.bf16.mxu0 %v902_v17  ;;  %v934_v53 = vpack.c.bf16 %v133_v46, %v117_v44  ;;  %v914_v54 = vpack.c.bf16 %v164_v48, %v148_v47  ;;  %v147_v55 = vld [vmem:[%s1617_s2 + $0x420] sm:$0xff]  ;;  %v149_v57 = vld [vmem:[%s1617_s2 + $0x430] sm:$0xff]  ;;  %v936_v58 = vpack.c.bf16 %v166_v50, %v150_v49  ;;  %v24_v60 = vld [vmem:[%s1617_s2 + $0x48] sm:$0xff] }
  0x1c   :  { %925 = vmatprep.subr.bf16.mxu1 %v924_v21  ;;  %434 = vmatprep.mubr.f32.mxu0 %v1034_v3  ;;  %v163_v56 = vld [vmem:[%s1617_s2 + $0x4a0] sm:$0x7]  ;;  %v165_v59 = vld [vmem:[%s1617_s2 + $0x4b0] sm:$0x7]  ;;  %v40_v61 = vld [vmem:[%s1617_s2 + $0xc8] sm:$0xff] }
  0x1d   :  { %505 = vmatprep.mubr.f32.mxu1 %v1034_v3  ;;  %v26_v62 = vld [vmem:[%s1617_s2 + $0x58] sm:$0xff]  ;;  %v917_v0 = vpack.c.bf16 %v163_v56, %v147_v55  ;;  %v939_v1 = vpack.c.bf16 %v165_v59, %v149_v57  ;;  %v942_v2 = vpack.c.bf16 %v40_v61, %v24_v60  ;;  %v23_v4 = vld [vmem:[%s1617_s2 + $0x40] sm:$0xff]  ;;  %v25_v6 = vld [vmem:[%s1617_s2 + $0x50] sm:$0xff] }
  0x1e   :  { %905 = vmatpush1.bf16.msra.mxu0 %v904_v27  ;;  %v42_v63 = vld [vmem:[%s1617_s2 + $0xd8] sm:$0xff]  ;;  %v39_v5 = vld [vmem:[%s1617_s2 + $0xc0] sm:$0xff]  ;;  %v41_v8 = vld [vmem:[%s1617_s2 + $0xd0] sm:$0xff] }
  0x1f   :  { %927 = vmatpush1.bf16.msra.mxu1 %v926_v28  ;;  %907 = vmatprep.subr.bf16.mxu0 %v906_v29  ;;  %v964_v7 = vpack.c.bf16 %v42_v63, %v26_v62  ;;  %v56_v9 = vld [vmem:[%s1617_s2 + $0x148] sm:$0xff]  ;;  %v58_v11 = vld [vmem:[%s1617_s2 + $0x158] sm:$0xff]  ;;  %v944_v13 = vpack.c.bf16 %v39_v5, %v23_v4  ;;  %v966_v15 = vpack.c.bf16 %v41_v8, %v25_v6  ;;  %v55_v17 = vld [vmem:[%s1617_s2 + $0x140] sm:$0xff] }
  0x20   :  { %929 = vmatprep.subr.bf16.mxu1 %v928_v33  ;;  %v72_v10 = vld [vmem:[%s1617_s2 + $0x1c8] sm:$0xff]  ;;  %v74_v12 = vld [vmem:[%s1617_s2 + $0x1d8] sm:$0xff]  ;;  %v71_v18 = vld [vmem:[%s1617_s2 + $0x1c0] sm:$0xff] }
  0x21   :  { %v946_v16 = vpack.c.bf16 %v72_v10, %v56_v9  ;;  %v57_v19 = vld [vmem:[%s1617_s2 + $0x150] sm:$0xff]  ;;  %v968_v20 = vpack.c.bf16 %v74_v12, %v58_v11  ;;  %v88_v22 = vld [vmem:[%s1617_s2 + $0x248] sm:$0xff]  ;;  %v90_v24 = vld [vmem:[%s1617_s2 + $0x258] sm:$0xff]  ;;  %v948_v26 = vpack.c.bf16 %v71_v18, %v55_v17 }
  0x22   :  { %909 = vmatpush1.bf16.msra.mxu0 %v908_v39  ;;  %v73_v21 = vld [vmem:[%s1617_s2 + $0x1d0] sm:$0xff]  ;;  %v104_v23 = vld [vmem:[%s1617_s2 + $0x2c8] sm:$0xff]  ;;  %v106_v25 = vld [vmem:[%s1617_s2 + $0x2d8] sm:$0xff] }
  0x23   :  { %931 = vmatpush1.bf16.msra.mxu1 %v930_v40  ;;  %911 = vmatprep.subr.bf16.mxu0 %v910_v41  ;;  %v970_v27 = vpack.c.bf16 %v73_v21, %v57_v19  ;;  %v950_v28 = vpack.c.bf16 %v104_v23, %v88_v22  ;;  %v87_v29 = vld [vmem:[%s1617_s2 + $0x240] sm:$0xff]  ;;  %v89_v31 = vld [vmem:[%s1617_s2 + $0x250] sm:$0xff]  ;;  %v972_v32 = vpack.c.bf16 %v106_v25, %v90_v24  ;;  %v120_v34 = vld [vmem:[%s1617_s2 + $0x348] sm:$0xff] }
  0x24   :  { %933 = vmatprep.subr.bf16.mxu1 %v932_v45  ;;  %v103_v30 = vld [vmem:[%s1617_s2 + $0x2c0] sm:$0xff]  ;;  %v105_v33 = vld [vmem:[%s1617_s2 + $0x2d0] sm:$0xff]  ;;  %v136_v35 = vld [vmem:[%s1617_s2 + $0x3c8] sm:$0xff] }
  0x25   :  { %v122_v36 = vld [vmem:[%s1617_s2 + $0x358] sm:$0xff]  ;;  %v952_v38 = vpack.c.bf16 %v103_v30, %v87_v29  ;;  %v974_v39 = vpack.c.bf16 %v105_v33, %v89_v31  ;;  %v954_v40 = vpack.c.bf16 %v136_v35, %v120_v34  ;;  %v119_v41 = vld [vmem:[%s1617_s2 + $0x340] sm:$0xff]  ;;  %v121_v43 = vld [vmem:[%s1617_s2 + $0x350] sm:$0xff] }
  0x26   :  { %913 = vmatpush1.bf16.msra.mxu0 %v912_v51  ;;  %v138_v37 = vld [vmem:[%s1617_s2 + $0x3d8] sm:$0xff]  ;;  %v135_v42 = vld [vmem:[%s1617_s2 + $0x3c0] sm:$0xff]  ;;  %v137_v45 = vld [vmem:[%s1617_s2 + $0x3d0] sm:$0xff] }
  0x27   :  { %935 = vmatpush1.bf16.msra.mxu1 %v934_v53  ;;  %916 = vmatprep.subr.msk.bf16.mxu0 %vm1164_vm2, %v914_v54  ;;  %v976_v44 = vpack.c.bf16 %v138_v37, %v122_v36  ;;  %v152_v46 = vld [vmem:[%s1617_s2 + $0x448] sm:$0xff]  ;;  %v154_v48 = vld [vmem:[%s1617_s2 + $0x458] sm:$0xff]  ;;  %v956_v50 = vpack.c.bf16 %v135_v42, %v119_v41  ;;  %v151_v51 = vld [vmem:[%s1617_s2 + $0x440] sm:$0xff]  ;;  %v978_v53 = vpack.c.bf16 %v137_v45, %v121_v43 }
  0x28   :  { %938 = vmatprep.subr.msk.bf16.mxu1 %vm1164_vm2, %v936_v58  ;;  %v168_v47 = vld [vmem:[%s1617_s2 + $0x4c8] sm:$0x7]  ;;  %v170_v49 = vld [vmem:[%s1617_s2 + $0x4d8] sm:$0x7]  ;;  %v167_v55 = vld [vmem:[%s1617_s2 + $0x4c0] sm:$0x7] }
  0x29   :  { %v958_v54 = vpack.c.bf16 %v168_v47, %v152_v46  ;;  %v153_v56 = vld [vmem:[%s1617_s2 + $0x450] sm:$0xff]  ;;  %v980_v58 = vpack.c.bf16 %v170_v49, %v154_v48  ;;  %v28_v59 = vld [vmem:[%s1617_s2 + $0x68] sm:$0xff]  ;;  %v808_v61 = vld [vmem:[%s1619_s1] sm:$0x3f] }
  0x2a   :  { %919 = vmatpush1.bf16.msk.msra.mxu0 %vm1164_vm2, %v917_v0  ;;  %v169_v57 = vld [vmem:[%s1617_s2 + $0x4d0] sm:$0x7]  ;;  %v44_v60 = vld [vmem:[%s1617_s2 + $0xe8] sm:$0xff]  ;;  %v30_v62 = vld [vmem:[%s1617_s2 + $0x78] sm:$0xff]  ;;  %811 = vperm.xlu0 %1033, %v808_v61   ;;  %v961_v0 = vpack.c.bf16 %v167_v55, %v151_v51 }
  0x2b   :  { %941 = vmatpush1.bf16.msk.msra.mxu1 %vm1164_vm2, %v939_v1  ;;  %943 = vmatprep.subr.bf16.mxu0 %v942_v2  ;;  %v46_v63 = vld [vmem:[%s1617_s2 + $0xf8] sm:$0xff]  ;;  %v983_v1 = vpack.c.bf16 %v169_v57, %v153_v56  ;;  %v986_v2 = vpack.c.bf16 %v44_v60, %v28_v59  ;;  %v27_v4 = vld [vmem:[%s1617_s2 + $0x60] sm:$0xff]  ;;  %v29_v6 = vld [vmem:[%s1617_s2 + $0x70] sm:$0xff] }
  0x2c   :  { %965 = vmatprep.subr.bf16.mxu1 %v964_v7  ;;  %v43_v5 = vld [vmem:[%s1617_s2 + $0xe0] sm:$0xff]  ;;  %v1008_v7 = vpack.c.bf16 %v46_v63, %v30_v62  ;;  %v45_v8 = vld [vmem:[%s1617_s2 + $0xf0] sm:$0xff]  ;;  %v60_v9 = vld [vmem:[%s1617_s2 + $0x168] sm:$0xff] }
  0x2d   :  { %838 = vmatmul.mubr.msk.f32.vlgmr.msra.gmra.mrb[2].mxu0 %vm175_vm3, %v1228_v14  ;;  %v76_v10 = vld [vmem:[%s1617_s2 + $0x1e8] sm:$0xff]  ;;  %v62_v11 = vld [vmem:[%s1617_s2 + $0x178] sm:$0xff]  ;;  %v59_v17 = vld [vmem:[%s1617_s2 + $0x160] sm:$0xff] }
  0x2e   :  { %841 = vmatmul.mubr.msk.f32.vlgmr.msra.gmra.mrb[2].mxu1 %vm175_vm3, %v1228_v14  ;;  %945 = vmatpush1.bf16.msra.mxu0 %v944_v13  ;;  %v78_v12 = vld [vmem:[%s1617_s2 + $0x1f8] sm:$0xff]  ;;  %v988_v13 = vpack.c.bf16 %v43_v5, %v27_v4  ;;  %v75_v18 = vld [vmem:[%s1617_s2 + $0x1e0] sm:$0xff]  ;;  %v61_v19 = vld [vmem:[%s1617_s2 + $0x170] sm:$0xff] }
  0x2f   :  { %967 = vmatpush1.bf16.msra.mxu1 %v966_v15  ;;  %947 = vmatprep.subr.bf16.mxu0 %v946_v16  ;;  %v1010_v15 = vpack.c.bf16 %v45_v8, %v29_v6  ;;  %v990_v16 = vpack.c.bf16 %v76_v10, %v60_v9  ;;  %v77_v21 = vld [vmem:[%s1617_s2 + $0x1f0] sm:$0xff]  ;;  %v92_v22 = vld [vmem:[%s1617_s2 + $0x268] sm:$0xff]  ;;  %v94_v24 = vld [vmem:[%s1617_s2 + $0x278] sm:$0xff] }
  0x30   :  { %969 = vmatprep.subr.bf16.mxu1 %v968_v20  ;;  %576 = vmatprep.mubr.f32.mxu0 %v1034_v3  ;;  %v1012_v20 = vpack.c.bf16 %v78_v12, %v62_v11  ;;  %v108_v23 = vld [vmem:[%s1617_s2 + $0x2e8] sm:$0xff]  ;;  %v110_v25 = vld [vmem:[%s1617_s2 + $0x2f8] sm:$0xff]  ;;  %v91_v29 = vld [vmem:[%s1617_s2 + $0x260] sm:$0xff] }
  0x31   :  { %647 = vmatprep.mubr.f32.mxu1 %v1034_v3  ;;  %v107_v30 = vld [vmem:[%s1617_s2 + $0x2e0] sm:$0xff]  ;;  %v93_v31 = vld [vmem:[%s1617_s2 + $0x270] sm:$0xff]  ;;  %v124_v34 = vld [vmem:[%s1617_s2 + $0x368] sm:$0xff] }
  0x32   :  { %949 = vmatpush1.bf16.msra.mxu0 %v948_v26  ;;  %v992_v26 = vpack.c.bf16 %v75_v18, %v59_v17  ;;  %v109_v33 = vld [vmem:[%s1617_s2 + $0x2f0] sm:$0xff]  ;;  %v140_v35 = vld [vmem:[%s1617_s2 + $0x3e8] sm:$0xff]  ;;  %v126_v36 = vld [vmem:[%s1617_s2 + $0x378] sm:$0xff] }
  0x33   :  { %971 = vmatpush1.bf16.msra.mxu1 %v970_v27  ;;  %951 = vmatprep.subr.bf16.mxu0 %v950_v28  ;;  %v1014_v27 = vpack.c.bf16 %v77_v21, %v61_v19  ;;  %v994_v28 = vpack.c.bf16 %v108_v23, %v92_v22  ;;  %v142_v37 = vld [vmem:[%s1617_s2 + $0x3f8] sm:$0xff]  ;;  %v123_v41 = vld [vmem:[%s1617_s2 + $0x360] sm:$0xff]  ;;  %v125_v43 = vld [vmem:[%s1617_s2 + $0x370] sm:$0xff] }
  0x34   :  { %973 = vmatprep.subr.bf16.mxu1 %v972_v32  ;;  %v1016_v32 = vpack.c.bf16 %v110_v25, %v94_v24  ;;  %v139_v42 = vld [vmem:[%s1617_s2 + $0x3e0] sm:$0xff]  ;;  %v156_v45 = vld [vmem:[%s1617_s2 + $0x468] sm:$0xff]  ;;  %v158_v47 = vld [vmem:[%s1617_s2 + $0x478] sm:$0xff] }
  0x35   :  { %v172_v46 = vld [vmem:[%s1617_s2 + $0x4e8] sm:$0x7]  ;;  %v174_v48 = vld [vmem:[%s1617_s2 + $0x4f8] sm:$0x7]  ;;  %v1000_v49 = vpack.c.bf16 %v139_v42, %v123_v41  ;;  %v157_v56 = vld [vmem:[%s1617_s2 + $0x470] sm:$0xff] }
  0x36   :  { %953 = vmatpush1.bf16.msra.mxu0 %v952_v38  ;;  %v996_v38 = vpack.c.bf16 %v107_v30, %v91_v29  ;;  %v1002_v51 = vpack.c.bf16 %v172_v46, %v156_v45  ;;  %v1024_v55 = vpack.c.bf16 %v174_v48, %v158_v47  ;;  %v173_v57 = vld [vmem:[%s1617_s2 + $0x4f0] sm:$0x7] }
  0x37   :  { %975 = vmatpush1.bf16.msra.mxu1 %v974_v39  ;;  %955 = vmatprep.subr.bf16.mxu0 %v954_v40  ;;  %v1018_v39 = vpack.c.bf16 %v109_v33, %v93_v31  ;;  %v998_v40 = vpack.c.bf16 %v140_v35, %v124_v34  ;;  %v1027_v59 = vpack.c.bf16 %v173_v57, %v157_v56 }
  0x38   :  { %977 = vmatprep.subr.bf16.mxu1 %v976_v44  ;;  %v141_v44 = vld [vmem:[%s1617_s2 + $0x3f0] sm:$0xff] }
  0x3a   :  { %957 = vmatpush1.bf16.msra.mxu0 %v956_v50  ;;  %v1022_v50 = vpack.c.bf16 %v141_v44, %v125_v43 }
  0x3b   :  { %979 = vmatpush1.bf16.msra.mxu1 %v978_v53  ;;  %960 = vmatprep.subr.msk.bf16.mxu0 %vm1164_vm2, %v958_v54  ;;  %v155_v53 = vld [vmem:[%s1617_s2 + $0x460] sm:$0xff] }
  0x3c   :  { %982 = vmatprep.subr.msk.bf16.mxu1 %vm1164_vm2, %v980_v58  ;;  %v171_v54 = vld [vmem:[%s1617_s2 + $0x4e0] sm:$0x7] }
  0x3d   :  { %v1005_v58 = vpack.c.bf16 %v171_v54, %v155_v53 }
  0x3e   :  { %963 = vmatpush1.bf16.msk.msra.mxu0 %vm1164_vm2, %v961_v0 }
  0x3f   :  { %985 = vmatpush1.bf16.msk.msra.mxu1 %vm1164_vm2, %v983_v1  ;;  %987 = vmatprep.subr.bf16.mxu0 %v986_v2 }
  0x40   :  { %1009 = vmatprep.subr.bf16.mxu1 %v1008_v7 }
  0x41   :  { %844 = vmatmul.mubr.msk.f32.vlgmr.msra.gmra.mrb[4].mxu0 %vm175_vm3, %v1228_v14 }
  0x42   :  { %847 = vmatmul.mubr.msk.f32.vlgmr.msra.gmra.mrb[4].mxu1 %vm175_vm3, %v1228_v14  ;;  %989 = vmatpush1.bf16.msra.mxu0 %v988_v13 }
  0x43   :  { %1011 = vmatpush1.bf16.msra.mxu1 %v1010_v15  ;;  %991 = vmatprep.subr.bf16.mxu0 %v990_v16 }
  0x44   :  { %1013 = vmatprep.subr.bf16.mxu1 %v1012_v20  ;;  %718 = vmatprep.mubr.f32.mxu0 %v1034_v3 }
  0x45   :  { %789 = vmatprep.mubr.f32.mxu1 %v1034_v3  ;;  %v1020_v3 = vpack.c.bf16 %v142_v37, %v126_v36 }
  0x46   :  { %993 = vmatpush1.bf16.msra.mxu0 %v992_v26 }
  0x47   :  { %1015 = vmatpush1.bf16.msra.mxu1 %v1014_v27  ;;  %995 = vmatprep.subr.bf16.mxu0 %v994_v28 }
  0x48   :  { %1017 = vmatprep.subr.bf16.mxu1 %v1016_v32 }
  0x4a   :  { %997 = vmatpush1.bf16.msra.mxu0 %v996_v38 }
  0x4b   :  { %1019 = vmatpush1.bf16.msra.mxu1 %v1018_v39  ;;  %999 = vmatprep.subr.bf16.mxu0 %v998_v40 }
  0x4c   :  { %1021 = vmatprep.subr.bf16.mxu1 %v1020_v3 }
  0x4e   :  { %1001 = vmatpush1.bf16.msra.mxu0 %v1000_v49 }
  0x4f   :  { %1023 = vmatpush1.bf16.msra.mxu1 %v1022_v50  ;;  %1004 = vmatprep.subr.msk.bf16.mxu0 %vm1164_vm2, %v1002_v51 }
  0x50   :  { %1026 = vmatprep.subr.msk.bf16.mxu1 %vm1164_vm2, %v1024_v55 }
  0x52   :  { %1007 = vmatpush1.bf16.msk.msra.mxu0 %vm1164_vm2, %v1005_v58 }
  0x53   :  { %1029 = vmatpush1.bf16.msk.msra.mxu1 %vm1164_vm2, %v1027_v59 }
  0x55   :  { %850 = vmatmul.mubr.msk.f32.vlgmr.msra.gmra.mrb[6].mxu0 %vm175_vm3, %v1228_v14 }
  0x56   :  { %853 = vmatmul.mubr.msk.f32.vlgmr.msra.gmra.mrb[6].mxu1 %vm175_vm3, %v1228_v14 }
  0xa9   :  { %v812_v19 = vpop.permute.xlu0 %811 }
  0xec   :  { %v294_v60 = vpop.f32.mrb[0].mxu0 }
  0xed   :  { %v365_v61 = vpop.f32.mrb[0].mxu1  ;;  %v296_v62 = vpop.f32.mrb[1].mxu0 }
  0xee   :  { %v367_v63 = vpop.f32.mrb[1].mxu1 }
 0x100   :  { %v436_v0 = vpop.f32.mrb[2].mxu0 }
 0x101   :  { %v796_v1 = vmax.f32 %v294_v60, %v436_v0  ;;  %v507_v2 = vpop.f32.mrb[2].mxu1  ;;  %v438_v4 = vpop.f32.mrb[3].mxu0 }
 0x102   :  { %v798_v5 = vmax.f32 %v365_v61, %v507_v2  ;;  %v797_v6 = vmax.f32 %v296_v62, %v438_v4  ;;  %v509_v7 = vpop.f32.mrb[3].mxu1 }
 0x103   :  { %v799_v8 = vmax.f32 %v367_v63, %v509_v7 }
 0x114   :  { %v578_v52 = vpop.f32.mrb[4].mxu0 }
 0x115   :  { %v649_v9 = vpop.f32.mrb[4].mxu1  ;;  %v580_v10 = vpop.f32.mrb[5].mxu0 }
 0x116   :  { %v651_v11 = vpop.f32.mrb[5].mxu1 }
 0x128   :  { %v720_v12 = vpop.f32.mrb[6].mxu0 }
 0x129   :  { %v800_v13 = vmax.f32 %v578_v52, %v720_v12  ;;  %v791_v15 = vpop.f32.mrb[6].mxu1  ;;  %v722_v14 = vpop.f32.mrb[7].mxu0 }
 0x12a   :  { %v802_v16 = vmax.f32 %v649_v9, %v791_v15  ;;  %v801_v17 = vmax.f32 %v580_v10, %v722_v14  ;;  %v793_v18 = vpop.f32.mrb[7].mxu1 }
 0x12b   :  { %v804_v20 = vmax.f32 %v796_v1, %v800_v13  ;;  %v803_v21 = vmax.f32 %v651_v11, %v793_v18 }
 0x12c   :  { %v806_v22 = vmax.f32 %v798_v5, %v802_v16  ;;  %v805_v23 = vmax.f32 %v797_v6, %v801_v17 }
 0x12d   :  { %v807_v24 = vmax.f32 %v799_v8, %v803_v21  ;;  %v814_v25 = vadd.f32 %v812_v19, %v804_v20 }
 0x12e   :  { %v815_v26 = vadd.f32 %v812_v19, %v805_v23  ;;  %v816_v27 = vadd.f32 %v812_v19, %v806_v22 }
 0x12f   :  { %v817_v28 = vadd.f32 %v812_v19, %v807_v24  ;;  %v818_v29 = vmax.f32 %v814_v25, 0.0 }
 0x130   :  { %v819_v30 = vmax.f32 %v815_v26, 0.0  ;;  %v820_v31 = vmax.f32 %v816_v27, 0.0 }
 0x131   :  { %v821_v32 = vmax.f32 %v817_v28, 0.0  ;;  %822 = vst [vmem:[%s1620_s3] sm:$0x3f] %v818_v29 }
 0x132   :  { %823 = vst [vmem:[%s1620_s3 + $0x8] sm:$0x3f] %v819_v30  ;;  %824 = vst [vmem:[%s1620_s3 + $0x10] sm:$0x3f] %v820_v31 }
 0x133   :  { %825 = vst [vmem:[%s1620_s3 + $0x18] sm:$0x3f] %v821_v32 }

// kernel: lenet_forward.4
= control target key start
LH: loop header
LB: loop body
LE: loop exit
PB: predicated region body
PF: predicated region fallthrough
CT: control target
= control target key end

     0   :  { %v378_v3 = vmov 0   ;;  %vm94_vm0 = vcmask 179200   ;;  %vm101_vm1 = vcmask 1045504   ;;  %s655_s2 = inlined_call_operand.vmem [shape: f32[1,150,512], index: 2, kind: input, shape index: {}]   ;;  %s656_s0 = inlined_call_operand.vmem [shape: f32[16,150], index: 0, kind: input, shape index: {}]   ;;  %s657_s1 = inlined_call_operand.vmem [shape: f32[16,1], index: 1, kind: input, shape index: {}]   ;;  %s658_s3 = inlined_call_operand.vmem [shape: f32[16,128], index: 3, kind: output, shape index: {}]  }
   0x1   :  { %v19_v0 = vld [vmem:[%s655_s2 + $0x8] sm:$0xff]  ;;  %v21_v2 = vld [vmem:[%s655_s2 + $0x18] sm:$0xff]  ;;  %377 = vset.pattern.permute.xlu0 %v378_v3  ;;  %v18_v6 = vld [vmem:[%s655_s2] sm:$0xff] }
   0x2   :  { %v23_v1 = vld [vmem:[%s655_s2 + $0x28] sm:$0xff]  ;;  %v25_v5 = vld [vmem:[%s655_s2 + $0x38] sm:$0xff]  ;;  %v22_v7 = vld [vmem:[%s655_s2 + $0x20] sm:$0xff] }
   0x3   :  { %v304_v4 = vpack.c.bf16 %v23_v1, %v19_v0  ;;  %v340_v8 = vpack.c.bf16 %v25_v5, %v21_v2  ;;  %v306_v9 = vpack.c.bf16 %v22_v7, %v18_v6  ;;  %v20_v10 = vld [vmem:[%s655_s2 + $0x10] sm:$0xff]  ;;  %v27_v12 = vld [vmem:[%s655_s2 + $0x48] sm:$0xff]  ;;  %v29_v15 = vld [vmem:[%s655_s2 + $0x58] sm:$0xff] }
   0x4   :  { %v24_v11 = vld [vmem:[%s655_s2 + $0x30] sm:$0xff]  ;;  %v31_v14 = vld [vmem:[%s655_s2 + $0x68] sm:$0xff]  ;;  %v33_v16 = vld [vmem:[%s655_s2 + $0x78] sm:$0xff] }
   0x5   :  { %305 = vmatprep.subr.bf16.mxu0 %v304_v4  ;;  %v342_v13 = vpack.c.bf16 %v24_v11, %v20_v10  ;;  %341 = vmatprep.subr.bf16.mxu1 %v340_v8  ;;  %v308_v17 = vpack.c.bf16 %v31_v14, %v27_v12  ;;  %v344_v18 = vpack.c.bf16 %v33_v16, %v29_v15  ;;  %v26_v19 = vld [vmem:[%s655_s2 + $0x40] sm:$0xff]  ;;  %v28_v21 = vld [vmem:[%s655_s2 + $0x50] sm:$0xff]  ;;  %v35_v24 = vld [vmem:[%s655_s2 + $0x88] sm:$0xff] }
   0x6   :  { %307 = vmatpush1.bf16.msra.mxu0 %v306_v9  ;;  %v30_v20 = vld [vmem:[%s655_s2 + $0x60] sm:$0xff]  ;;  %v32_v23 = vld [vmem:[%s655_s2 + $0x70] sm:$0xff]  ;;  %v39_v25 = vld [vmem:[%s655_s2 + $0xa8] sm:$0xff] }
   0x7   :  { %343 = vmatpush1.bf16.msra.mxu1 %v342_v13  ;;  %v310_v22 = vpack.c.bf16 %v30_v20, %v26_v19  ;;  %309 = vmatprep.subr.bf16.mxu0 %v308_v17  ;;  %v346_v26 = vpack.c.bf16 %v32_v23, %v28_v21  ;;  %v312_v27 = vpack.c.bf16 %v39_v25, %v35_v24  ;;  %v37_v28 = vld [vmem:[%s655_s2 + $0x98] sm:$0xff]  ;;  %v34_v30 = vld [vmem:[%s655_s2 + $0x80] sm:$0xff]  ;;  %v36_v33 = vld [vmem:[%s655_s2 + $0x90] sm:$0xff] }
   0x8   :  { %345 = vmatprep.subr.bf16.mxu1 %v344_v18  ;;  %v41_v29 = vld [vmem:[%s655_s2 + $0xb8] sm:$0xff]  ;;  %v38_v32 = vld [vmem:[%s655_s2 + $0xa0] sm:$0xff]  ;;  %v40_v34 = vld [vmem:[%s655_s2 + $0xb0] sm:$0xff] }
   0x9   :  { %v348_v31 = vpack.c.bf16 %v41_v29, %v37_v28  ;;  %v314_v35 = vpack.c.bf16 %v38_v32, %v34_v30  ;;  %v43_v36 = vld [vmem:[%s655_s2 + $0xc8] sm:$0xff]  ;;  %v45_v38 = vld [vmem:[%s655_s2 + $0xd8] sm:$0xff]  ;;  %v350_v39 = vpack.c.bf16 %v40_v34, %v36_v33  ;;  %v42_v42 = vld [vmem:[%s655_s2 + $0xc0] sm:$0xff] }
   0xa   :  { %311 = vmatpush1.bf16.msra.mxu0 %v310_v22  ;;  %v47_v37 = vld [vmem:[%s655_s2 + $0xe8] sm:$0xff]  ;;  %v49_v41 = vld [vmem:[%s655_s2 + $0xf8] sm:$0xff]  ;;  %v46_v43 = vld [vmem:[%s655_s2 + $0xe0] sm:$0xff] }
   0xb   :  { %347 = vmatpush1.bf16.msra.mxu1 %v346_v26  ;;  %313 = vmatprep.subr.bf16.mxu0 %v312_v27  ;;  %v316_v40 = vpack.c.bf16 %v47_v37, %v43_v36  ;;  %v352_v44 = vpack.c.bf16 %v49_v41, %v45_v38  ;;  %v44_v45 = vld [vmem:[%s655_s2 + $0xd0] sm:$0xff]  ;;  %v51_v47 = vld [vmem:[%s655_s2 + $0x108] sm:$0xff]  ;;  %v53_v49 = vld [vmem:[%s655_s2 + $0x118] sm:$0xff]  ;;  %v318_v51 = vpack.c.bf16 %v46_v43, %v42_v42 }
   0xc   :  { %349 = vmatprep.subr.bf16.mxu1 %v348_v31  ;;  %v48_v46 = vld [vmem:[%s655_s2 + $0xf0] sm:$0xff]  ;;  %v55_v48 = vld [vmem:[%s655_s2 + $0x128] sm:$0xff]  ;;  %v57_v50 = vld [vmem:[%s655_s2 + $0x138] sm:$0xff] }
   0xd   :  { %v354_v52 = vpack.c.bf16 %v48_v46, %v44_v45  ;;  %v320_v53 = vpack.c.bf16 %v55_v48, %v51_v47  ;;  %v50_v54 = vld [vmem:[%s655_s2 + $0x100] sm:$0xff]  ;;  %v52_v56 = vld [vmem:[%s655_s2 + $0x110] sm:$0xff]  ;;  %v356_v57 = vpack.c.bf16 %v57_v50, %v53_v49  ;;  %v59_v59 = vld [vmem:[%s655_s2 + $0x148] sm:$0xff] }
   0xe   :  { %315 = vmatpush1.bf16.msra.mxu0 %v314_v35  ;;  %v54_v55 = vld [vmem:[%s655_s2 + $0x120] sm:$0xff]  ;;  %v56_v58 = vld [vmem:[%s655_s2 + $0x130] sm:$0xff]  ;;  %v63_v60 = vld [vmem:[%s655_s2 + $0x168] sm:$0xff] }
   0xf   :  { %351 = vmatpush1.bf16.msra.mxu1 %v350_v39  ;;  %317 = vmatprep.subr.bf16.mxu0 %v316_v40  ;;  %v61_v61 = vld [vmem:[%s655_s2 + $0x158] sm:$0xff]  ;;  %v322_v63 = vpack.c.bf16 %v54_v55, %v50_v54  ;;  %v358_v0 = vpack.c.bf16 %v56_v58, %v52_v56  ;;  %v324_v1 = vpack.c.bf16 %v63_v60, %v59_v59  ;;  %v58_v2 = vld [vmem:[%s655_s2 + $0x140] sm:$0xff]  ;;  %v60_v4 = vld [vmem:[%s655_s2 + $0x150] sm:$0xff] }
  0x10   :  { %353 = vmatprep.subr.bf16.mxu1 %v352_v44  ;;  %v65_v62 = vld [vmem:[%s655_s2 + $0x178] sm:$0xff]  ;;  %v62_v3 = vld [vmem:[%s655_s2 + $0x160] sm:$0xff]  ;;  %v64_v6 = vld [vmem:[%s655_s2 + $0x170] sm:$0xff] }
  0x11   :  { %v360_v5 = vpack.c.bf16 %v65_v62, %v61_v61  ;;  %v67_v7 = vld [vmem:[%s655_s2 + $0x188] sm:$0xff]  ;;  %v69_v9 = vld [vmem:[%s655_s2 + $0x198] sm:$0xff]  ;;  %v326_v11 = vpack.c.bf16 %v62_v3, %v58_v2  ;;  %v362_v12 = vpack.c.bf16 %v64_v6, %v60_v4  ;;  %v66_v14 = vld [vmem:[%s655_s2 + $0x180] sm:$0xff] }
  0x12   :  { %319 = vmatpush1.bf16.msra.mxu0 %v318_v51  ;;  %v71_v8 = vld [vmem:[%s655_s2 + $0x1a8] sm:$0xff]  ;;  %v73_v10 = vld [vmem:[%s655_s2 + $0x1b8] sm:$0xff]  ;;  %v70_v15 = vld [vmem:[%s655_s2 + $0x1a0] sm:$0xff] }
  0x13   :  { %355 = vmatpush1.bf16.msra.mxu1 %v354_v52  ;;  %321 = vmatprep.subr.bf16.mxu0 %v320_v53  ;;  %v328_v13 = vpack.c.bf16 %v71_v8, %v67_v7  ;;  %v68_v16 = vld [vmem:[%s655_s2 + $0x190] sm:$0xff]  ;;  %v364_v17 = vpack.c.bf16 %v73_v10, %v69_v9  ;;  %v75_v19 = vld [vmem:[%s655_s2 + $0x1c8] sm:$0xff]  ;;  %v77_v21 = vld [vmem:[%s655_s2 + $0x1d8] sm:$0xff]  ;;  %v330_v23 = vpack.c.bf16 %v70_v15, %v66_v14 }
  0x14   :  { %357 = vmatprep.subr.bf16.mxu1 %v356_v57  ;;  %v72_v18 = vld [vmem:[%s655_s2 + $0x1b0] sm:$0xff]  ;;  %v79_v20 = vld [vmem:[%s655_s2 + $0x1e8] sm:$0xff]  ;;  %v81_v22 = vld [vmem:[%s655_s2 + $0x1f8] sm:$0xff] }
  0x15   :  { %v74_v24 = vld [vmem:[%s655_s2 + $0x1c0] sm:$0xff]  ;;  %v366_v26 = vpack.c.bf16 %v72_v18, %v68_v16  ;;  %v332_v27 = vpack.c.bf16 %v79_v20, %v75_v19  ;;  %v76_v28 = vld [vmem:[%s655_s2 + $0x1d0] sm:$0xff]  ;;  %v15_v30 = vld [vmem:[%s656_s0 + $0x8] sm:$0xff]  ;;  %v368_v31 = vpack.c.bf16 %v81_v22, %v77_v21 }
  0x16   :  { %323 = vmatpush1.bf16.msra.mxu0 %v322_v63  ;;  %v78_v25 = vld [vmem:[%s655_s2 + $0x1e0] sm:$0xff]  ;;  %v80_v29 = vld [vmem:[%s655_s2 + $0x1f0] sm:$0xff]  ;;  %v83_v32 = vld [vmem:[%s655_s2 + $0x208] sm:$0xff]  ;;  %298 = vmatprep.mubr.msk.f32.mxu0 %vm94_vm0, %v15_v30 }
  0x17   :  { %359 = vmatpush1.bf16.msra.mxu1 %v358_v0  ;;  %325 = vmatprep.subr.bf16.mxu0 %v324_v1  ;;  %v87_v33 = vld [vmem:[%s655_s2 + $0x228] sm:$0xff]  ;;  %v274_v34 = vld [vmem:[%s657_s1] sm:$0xff]  ;;  %v85_v35 = vld [vmem:[%s655_s2 + $0x218] sm:$0xff]  ;;  %v334_v37 = vpack.c.bf16 %v78_v25, %v74_v24  ;;  %v370_v39 = vpack.c.bf16 %v80_v29, %v76_v28 }
  0x18   :  { %361 = vmatprep.subr.bf16.mxu1 %v360_v5  ;;  %v89_v36 = vld [vmem:[%s655_s2 + $0x238] sm:$0xff]  ;;  %302 = vmatprep.mubr.msk.f32.mxu1 %vm94_vm0, %v15_v30  ;;  %v275_v38 = vld [vmem:[%s657_s1 + $0x8] sm:$0xff]  ;;  %v336_v40 = vpack.c.bf16 %v87_v33, %v83_v32  ;;  %v82_v41 = vld [vmem:[%s655_s2 + $0x200] sm:$0xff] }
  0x19   :  { %278 = vperm.xlu0 %377, %v274_v34   ;;  %v86_v42 = vld [vmem:[%s655_s2 + $0x220] sm:$0xff]  ;;  %v372_v43 = vpack.c.bf16 %v89_v36, %v85_v35  ;;  %v84_v44 = vld [vmem:[%s655_s2 + $0x210] sm:$0xff]  ;;  %v91_v48 = vld [vmem:[%s655_s2 + $0x248] sm:$0x3f] }
  0x1a   :  { %327 = vmatpush1.bf16.msra.mxu0 %v326_v11  ;;  %v88_v45 = vld [vmem:[%s655_s2 + $0x230] sm:$0xff]  ;;  %v338_v46 = vpack.c.bf16 %v86_v42, %v82_v41  ;;  %v93_v49 = vld [vmem:[%s655_s2 + $0x258] sm:$0x3f]  ;;  %v90_v50 = vld [vmem:[%s655_s2 + $0x240] sm:$0x3f] }
  0x1b   :  { %363 = vmatpush1.bf16.msra.mxu1 %v362_v12  ;;  %329 = vmatprep.subr.bf16.mxu0 %v328_v13  ;;  %v374_v47 = vpack.c.bf16 %v88_v45, %v84_v44  ;;  %v92_v51 = vld [vmem:[%s655_s2 + $0x250] sm:$0x3f]  ;;  %v14_v52 = vld [vmem:[%s656_s0] sm:$0xff]  ;;  %v17_v53 = vld [vmem:[%s656_s0 + $0x18] sm:$0xff] }
  0x1c   :  { %365 = vmatprep.subr.bf16.mxu1 %v364_v17  ;;  %v16_v54 = vld [vmem:[%s656_s0 + $0x10] sm:$0xff] }
  0x1d   :  { %283 = vperm.xlu0 %377, %v275_v38  }
  0x1e   :  { %331 = vmatpush1.bf16.msra.mxu0 %v330_v23 }
  0x1f   :  { %367 = vmatpush1.bf16.msra.mxu1 %v366_v26  ;;  %333 = vmatprep.subr.bf16.mxu0 %v332_v27 }
  0x20   :  { %369 = vmatprep.subr.bf16.mxu1 %v368_v31 }
  0x22   :  { %335 = vmatpush1.bf16.msra.mxu0 %v334_v37 }
  0x23   :  { %371 = vmatpush1.bf16.msra.mxu1 %v370_v39  ;;  %337 = vmatprep.subr.bf16.mxu0 %v336_v40 }
  0x24   :  { %373 = vmatprep.subr.bf16.mxu1 %v372_v43 }
  0x26   :  { %339 = vmatpush1.bf16.msra.mxu0 %v338_v46 }
  0x27   :  { %375 = vmatpush1.bf16.msra.mxu1 %v374_v47  ;;  %296 = vmatprep.subr.msk.mxu0 %vm101_vm1, %v91_v48 }
  0x28   :  { %300 = vmatprep.subr.msk.mxu1 %vm101_vm1, %v93_v49 }
  0x2a   :  { %297 = vmatpush1.msk.msra.mxu0 %vm101_vm1, %v90_v50 }
  0x2b   :  { %301 = vmatpush1.msk.msra.mxu1 %vm101_vm1, %v92_v51  ;;  %179 = vmatmul.mubr.f32.vlgmr.msra.gmra.mrb[0].mxu0 %v14_v52 }
  0x2c   :  { %256 = vmatmul.mubr.f32.vlgmr.msra.gmra.mrb[0].mxu1 %v14_v52  ;;  %299 = vmatprep.mubr.msk.f32.mxu0 %vm94_vm0, %v17_v53 }
  0x2d   :  { %303 = vmatprep.mubr.msk.f32.mxu1 %vm94_vm0, %v17_v53 }
  0x2f   :  { %185 = vmatmul.mubr.f32.gmra.mrb[2].mxu0 %v16_v54 }
  0x30   :  { %262 = vmatmul.mubr.f32.gmra.mrb[2].mxu1 %v16_v54 }
  0x98   :  { %v279_v61 = vpop.permute.xlu0 %278 }
  0x9c   :  { %v284_v8 = vpop.permute.xlu0 %283 }
  0xfe   :  { %v180_v55 = vpop.f32.mrb[0].mxu0 }
  0xff   :  { %v257_v56 = vpop.f32.mrb[0].mxu1  ;;  %v182_v57 = vpop.f32.mrb[1].mxu0 }
 0x100   :  { %v268_v58 = vmax.f32 %v180_v55, %v182_v57  ;;  %v259_v59 = vpop.f32.mrb[1].mxu1 }
 0x101   :  { %v270_v60 = vmax.f32 %v257_v56, %v259_v59 }
 0x102   :  { %v186_v62 = vpop.f32.mrb[2].mxu0 }
 0x103   :  { %v272_v63 = vmax.f32 %v268_v58, %v270_v60  ;;  %v263_v0 = vpop.f32.mrb[2].mxu1  ;;  %v188_v1 = vpop.f32.mrb[3].mxu0 }
 0x104   :  { %v269_v2 = vmax.f32 %v186_v62, %v188_v1  ;;  %v265_v3 = vpop.f32.mrb[3].mxu1 }
 0x105   :  { %v286_v4 = vadd.f32 %v279_v61, %v272_v63  ;;  %v271_v5 = vmax.f32 %v263_v0, %v265_v3 }
 0x107   :  { %v288_v6 = vmax.f32 %v286_v4, 0.0  ;;  %v273_v7 = vmax.f32 %v269_v2, %v271_v5 }
 0x109   :  { %290 = vst [vmem:[%s658_s3] sm:$0xff] %v288_v6  ;;  %v287_v9 = vadd.f32 %v284_v8, %v273_v7 }
 0x10b   :  { %v289_v10 = vmax.f32 %v287_v9, 0.0 }
 0x10d   :  { %291 = vst [vmem:[%s658_s3 + $0x8] sm:$0xff] %v289_v10 }

// kernel: lenet_forward.5
= control target key start
LH: loop header
LB: loop body
LE: loop exit
PB: predicated region body
PF: predicated region fallthrough
CT: control target
= control target key end

     0   :  { %v1250_v2 = vmov 0.0|0.0   ;;  %vm99_vm0 = vcmask 130048   ;;  %vm1252_vm1 = vmmov 0   ;;  %vm317_vm2 = vcmask 982016   ;;  %s1784_s1 = inlined_call_operand.vmem [shape: f32[400,120], index: 1, kind: input, shape index: {}]   ;;  %s1785_s0 = inlined_call_operand.vmem [shape: f32[1,32,400], index: 0, kind: input, shape index: {}]   ;;  %s1786_s3 = inlined_call_operand.vmem [shape: f32[4,120,84], index: 3, kind: input, shape index: {}]   ;;  %s1787_s2 = inlined_call_operand.vmem [shape: f32[1,120], index: 2, kind: input, shape index: {}]   ;;  %s1788_s5 = inlined_call_operand.vmem [shape: f32[84,128], index: 5, kind: input, shape index: {}]   ;;  %s1789_s4 = inlined_call_operand.vmem [shape: f32[1,84], index: 4, kind: input, shape index: {}]   ;;  %s1790_s6 = inlined_call_operand.vmem [shape: f32[1,128], index: 6, kind: input, shape index: {}]   ;;  %s1791_s7 = inlined_call_operand.vmem [shape: f32[8,128], index: 7, kind: output, shape index: {}]  }
   0x1   :  { %v58_v0 = vld [vmem:[%s1784_s1 + $0x80] sm:$0xff]  ;;  %v59_v1 = vld [vmem:[%s1784_s1 + $0x88] sm:$0xff]  ;;  %1121 = vmatprep.subr.bf16.mxu1 %v1250_v2  ;;  %v60_v10 = vld [vmem:[%s1784_s1 + $0x90] sm:$0xff]  ;;  %vm675_vm3 = vcmask 1043456   ;;  %vm671_vm4 = vcmask 687104  }
   0x2   :  { %v42_v3 = vld [vmem:[%s1784_s1] sm:$0xff]  ;;  %v1089_v4 = vpack.c.bf16 %v59_v1, %v58_v0  ;;  %v43_v5 = vld [vmem:[%s1784_s1 + $0x8] sm:$0xff]  ;;  %v61_v11 = vld [vmem:[%s1784_s1 + $0x98] sm:$0xff] }
   0x3   :  { %v74_v6 = vld [vmem:[%s1784_s1 + $0x100] sm:$0xff]  ;;  %v75_v7 = vld [vmem:[%s1784_s1 + $0x108] sm:$0xff]  ;;  %v1091_v8 = vpack.c.bf16 %v43_v5, %v42_v3  ;;  %v44_v12 = vld [vmem:[%s1784_s1 + $0x10] sm:$0xff]  ;;  %v1093_v13 = vpack.c.bf16 %v61_v11, %v60_v10 }
   0x4   :  { %v1122_v9 = vpack.c.bf16 %v75_v7, %v74_v6  ;;  %1090 = vmatprep.subr.bf16.mxu0 %v1089_v4  ;;  %v45_v14 = vld [vmem:[%s1784_s1 + $0x18] sm:$0xff]  ;;  %v76_v15 = vld [vmem:[%s1784_s1 + $0x110] sm:$0xff]  ;;  %v62_v19 = vld [vmem:[%s1784_s1 + $0xa0] sm:$0xff] }
   0x5   :  { %v77_v16 = vld [vmem:[%s1784_s1 + $0x118] sm:$0xff]  ;;  %1092 = vmatpush3.bf16.msra.mxu0 %v1091_v8  ;;  %v1095_v17 = vpack.c.bf16 %v45_v14, %v44_v12  ;;  %v63_v20 = vld [vmem:[%s1784_s1 + $0xa8] sm:$0xff]  ;;  %v46_v21 = vld [vmem:[%s1784_s1 + $0x20] sm:$0xff] }
   0x6   :  { %1123 = vmatpush1.bf16.msra.mxu1 %v1122_v9  ;;  %v1125_v18 = vpack.c.bf16 %v77_v16, %v76_v15  ;;  %1094 = vmatprep.subr.bf16.mxu0 %v1093_v13  ;;  %v1097_v22 = vpack.c.bf16 %v63_v20, %v62_v19  ;;  %v47_v23 = vld [vmem:[%s1784_s1 + $0x28] sm:$0xff]  ;;  %v78_v24 = vld [vmem:[%s1784_s1 + $0x120] sm:$0xff]  ;;  %v64_v26 = vld [vmem:[%s1784_s1 + $0xb0] sm:$0xff] }
   0x7   :  { %1124 = vmatprep.subr.bf16.mxu1 %v1250_v2  ;;  %v79_v25 = vld [vmem:[%s1784_s1 + $0x128] sm:$0xff]  ;;  %v65_v27 = vld [vmem:[%s1784_s1 + $0xb8] sm:$0xff]  ;;  %v1099_v28 = vpack.c.bf16 %v47_v23, %v46_v21  ;;  %v48_v30 = vld [vmem:[%s1784_s1 + $0x30] sm:$0xff] }
   0x8   :  { %v1128_v29 = vpack.c.bf16 %v79_v25, %v78_v24  ;;  %v1101_v31 = vpack.c.bf16 %v65_v27, %v64_v26  ;;  %v49_v32 = vld [vmem:[%s1784_s1 + $0x38] sm:$0xff]  ;;  %v80_v33 = vld [vmem:[%s1784_s1 + $0x130] sm:$0xff]  ;;  %v66_v35 = vld [vmem:[%s1784_s1 + $0xc0] sm:$0xff] }
   0x9   :  { %1096 = vmatpush3.bf16.msra.mxu0 %v1095_v17  ;;  %v81_v34 = vld [vmem:[%s1784_s1 + $0x138] sm:$0xff]  ;;  %v67_v36 = vld [vmem:[%s1784_s1 + $0xc8] sm:$0xff]  ;;  %v1103_v37 = vpack.c.bf16 %v49_v32, %v48_v30  ;;  %v50_v39 = vld [vmem:[%s1784_s1 + $0x40] sm:$0xff] }
   0xa   :  { %1126 = vmatpush1.bf16.msra.mxu1 %v1125_v18  ;;  %1098 = vmatprep.subr.bf16.mxu0 %v1097_v22  ;;  %v1131_v38 = vpack.c.bf16 %v81_v34, %v80_v33  ;;  %v1105_v40 = vpack.c.bf16 %v67_v36, %v66_v35  ;;  %v51_v41 = vld [vmem:[%s1784_s1 + $0x48] sm:$0xff]  ;;  %v82_v42 = vld [vmem:[%s1784_s1 + $0x140] sm:$0xff]  ;;  %v68_v44 = vld [vmem:[%s1784_s1 + $0xd0] sm:$0xff] }
   0xb   :  { %1127 = vmatprep.subr.bf16.mxu1 %v1250_v2  ;;  %v83_v43 = vld [vmem:[%s1784_s1 + $0x148] sm:$0xff]  ;;  %v69_v45 = vld [vmem:[%s1784_s1 + $0xd8] sm:$0xff]  ;;  %v1107_v46 = vpack.c.bf16 %v51_v41, %v50_v39  ;;  %v52_v48 = vld [vmem:[%s1784_s1 + $0x50] sm:$0xff] }
   0xc   :  { %v1134_v47 = vpack.c.bf16 %v83_v43, %v82_v42  ;;  %v53_v49 = vld [vmem:[%s1784_s1 + $0x58] sm:$0xff]  ;;  %v27_v50 = vld [vmem:[%s1785_s0 + $0x8] sm:$0xff]  ;;  %v1109_v51 = vpack.c.bf16 %v69_v45, %v68_v44  ;;  %v84_v52 = vld [vmem:[%s1784_s1 + $0x150] sm:$0xff] }
   0xd   :  { %1100 = vmatpush3.bf16.msra.mxu0 %v1099_v28  ;;  %v85_v53 = vld [vmem:[%s1784_s1 + $0x158] sm:$0xff]  ;;  %v70_v55 = vld [vmem:[%s1784_s1 + $0xe0] sm:$0xff]  ;;  %v71_v56 = vld [vmem:[%s1784_s1 + $0xe8] sm:$0xff]  ;;  %176 = vmatprep.mubr.f32.mxu0 %v27_v50  ;;  %v1111_v57 = vpack.c.bf16 %v53_v49, %v52_v48 }
   0xe   :  { %1129 = vmatpush1.bf16.msra.mxu1 %v1128_v29  ;;  %1102 = vmatprep.subr.bf16.mxu0 %v1101_v31  ;;  %v29_v54 = vld [vmem:[%s1785_s0 + $0x18] sm:$0xff]  ;;  %v1137_v58 = vpack.c.bf16 %v85_v53, %v84_v52  ;;  %v54_v59 = vld [vmem:[%s1784_s1 + $0x60] sm:$0xff]  ;;  %v1113_v60 = vpack.c.bf16 %v71_v56, %v70_v55  ;;  %v55_v61 = vld [vmem:[%s1784_s1 + $0x68] sm:$0xff] }
   0xf   :  { %1130 = vmatprep.subr.bf16.mxu1 %v1250_v2  ;;  %755 = vmatprep.mubr.msk.f32.mxu1 %vm99_vm0, %v29_v54  ;;  %v86_v62 = vld [vmem:[%s1784_s1 + $0x160] sm:$0xff]  ;;  %v87_v63 = vld [vmem:[%s1784_s1 + $0x168] sm:$0xff]  ;;  %v72_v0 = vld [vmem:[%s1784_s1 + $0xf0] sm:$0xff]  ;;  %v1115_v3 = vpack.c.bf16 %v55_v61, %v54_v59 }
  0x10   :  { %v73_v1 = vld [vmem:[%s1784_s1 + $0xf8] sm:$0xff]  ;;  %v1140_v4 = vpack.c.bf16 %v87_v63, %v86_v62  ;;  %v56_v5 = vld [vmem:[%s1784_s1 + $0x70] sm:$0xff]  ;;  %v90_v12 = vld [vmem:[%s1784_s1 + $0x180] sm:$0xff] }
  0x11   :  { %1104 = vmatpush3.bf16.msra.mxu0 %v1103_v37  ;;  %v1117_v6 = vpack.c.bf16 %v73_v1, %v72_v0  ;;  %v57_v7 = vld [vmem:[%s1784_s1 + $0x78] sm:$0xff]  ;;  %v88_v8 = vld [vmem:[%s1784_s1 + $0x170] sm:$0xff]  ;;  %v91_v13 = vld [vmem:[%s1784_s1 + $0x188] sm:$0xff] }
  0x12   :  { %1132 = vmatpush1.bf16.msra.mxu1 %v1131_v38  ;;  %1106 = vmatprep.subr.bf16.mxu0 %v1105_v40  ;;  %v89_v9 = vld [vmem:[%s1784_s1 + $0x178] sm:$0xff]  ;;  %v1119_v10 = vpack.c.bf16 %v57_v7, %v56_v5  ;;  %v760_v15 = vld [vmem:[%s1786_s3 + $0x80] sm:$0xff]  ;;  %v1146_v17 = vpack.c.bf16 %v91_v13, %v90_v12  ;;  %v31_v18 = vld [vmem:[%s1785_s0 + $0x28] sm:$0xff] }
  0x13   :  { %1133 = vmatprep.subr.bf16.mxu1 %v1250_v2  ;;  %v1143_v11 = vpack.c.bf16 %v89_v9, %v88_v8  ;;  %v759_v14 = vld [vmem:[%s1786_s3 + $0x78] sm:$0xff]  ;;  %v26_v16 = vld [vmem:[%s1785_s0] sm:$0xff]  ;;  %v287_v21 = vld [vmem:[%s1786_s3 + $0x8] sm:$0xff]  ;;  %v1251_v8 = vmov 0.0  }
  0x14   :  { %v286_v19 = vld [vmem:[%s1786_s3] sm:$0xff]  ;;  %v1149_v20 = vpack.c.bf16 %v760_v15, %v759_v14  ;;  %v761_v22 = vld [vmem:[%s1786_s3 + $0x88] sm:$0xff]  ;;  %v762_v23 = vld [vmem:[%s1786_s3 + $0x90] sm:$0xff] }
  0x15   :  { %1108 = vmatpush3.bf16.msra.mxu0 %v1107_v46  ;;  %v30_v24 = vld [vmem:[%s1785_s0 + $0x20] sm:$0xff]  ;;  %v28_v25 = vld [vmem:[%s1785_s0 + $0x10] sm:$0xff]  ;;  %v33_v26 = vld [vmem:[%s1785_s0 + $0x38] sm:$0xff]  ;;  %v1170_v28 = vpack.c.bf16 %v287_v21, %v286_v19  ;;  %v1152_v30 = vpack.c.bf16 %v762_v23, %v761_v22 }
  0x16   :  { %1135 = vmatpush1.bf16.msra.mxu1 %v1134_v47  ;;  %1110 = vmatprep.subr.bf16.mxu0 %v1109_v51  ;;  %v35_v27 = vld [vmem:[%s1785_s0 + $0x48] sm:$0xff]  ;;  %v288_v29 = vld [vmem:[%s1786_s3 + $0x10] sm:$0xff]  ;;  %v289_v31 = vld [vmem:[%s1786_s3 + $0x18] sm:$0xff] }
  0x17   :  { %1136 = vmatprep.subr.bf16.mxu1 %v1250_v2  ;;  %v763_v32 = vld [vmem:[%s1786_s3 + $0x98] sm:$0xff]  ;;  %v764_v33 = vld [vmem:[%s1786_s3 + $0xa0] sm:$0xff]  ;;  %v32_v34 = vld [vmem:[%s1785_s0 + $0x30] sm:$0xff]  ;;  %v1173_v38 = vpack.c.bf16 %v289_v31, %v288_v29 }
  0x18   :  { %v34_v35 = vld [vmem:[%s1785_s0 + $0x40] sm:$0xff]  ;;  %v39_v36 = vld [vmem:[%s1785_s0 + $0x68] sm:$0xff]  ;;  %v37_v37 = vld [vmem:[%s1785_s0 + $0x58] sm:$0xff]  ;;  %v1155_v40 = vpack.c.bf16 %v764_v33, %v763_v32 }
  0x19   :  { %1112 = vmatpush3.bf16.msra.mxu0 %v1111_v57  ;;  %v290_v39 = vld [vmem:[%s1786_s3 + $0x20] sm:$0xff]  ;;  %v291_v41 = vld [vmem:[%s1786_s3 + $0x28] sm:$0xff]  ;;  %v766_v43 = vld [vmem:[%s1786_s3 + $0xb0] sm:$0xff] }
  0x1a   :  { %1138 = vmatpush1.bf16.msra.mxu1 %v1137_v58  ;;  %1114 = vmatprep.subr.bf16.mxu0 %v1113_v60  ;;  %v765_v42 = vld [vmem:[%s1786_s3 + $0xa8] sm:$0xff]  ;;  %v38_v44 = vld [vmem:[%s1785_s0 + $0x60] sm:$0xff]  ;;  %v36_v45 = vld [vmem:[%s1785_s0 + $0x50] sm:$0xff]  ;;  %v1176_v47 = vpack.c.bf16 %v291_v41, %v290_v39 }
  0x1b   :  { %1139 = vmatprep.subr.bf16.mxu1 %v1250_v2  ;;  %v41_v46 = vld [vmem:[%s1785_s0 + $0x78] sm:$0xff]  ;;  %v1158_v48 = vpack.c.bf16 %v766_v43, %v765_v42  ;;  %v292_v49 = vld [vmem:[%s1786_s3 + $0x30] sm:$0xff]  ;;  %v294_v53 = vld [vmem:[%s1786_s3 + $0x40] sm:$0xff] }
  0x1c   :  { %v293_v50 = vld [vmem:[%s1786_s3 + $0x38] sm:$0xff]  ;;  %v40_v51 = vld [vmem:[%s1785_s0 + $0x70] sm:$0xff]  ;;  %v295_v54 = vld [vmem:[%s1786_s3 + $0x48] sm:$0xff] }
  0x1d   :  { %1116 = vmatpush3.bf16.msra.mxu0 %v1115_v3  ;;  %v1179_v52 = vpack.c.bf16 %v293_v50, %v292_v49  ;;  %v1182_v55 = vpack.c.bf16 %v295_v54, %v294_v53  ;;  %v767_v56 = vld [vmem:[%s1786_s3 + $0xb8] sm:$0xff]  ;;  %v768_v57 = vld [vmem:[%s1786_s3 + $0xc0] sm:$0xff]  ;;  %v296_v59 = vld [vmem:[%s1786_s3 + $0x50] sm:$0xff] }
  0x1e   :  { %1141 = vmatpush1.bf16.msra.mxu1 %v1140_v4  ;;  %1118 = vmatprep.subr.bf16.mxu0 %v1117_v6  ;;  %v1161_v58 = vpack.c.bf16 %v768_v57, %v767_v56  ;;  %v297_v60 = vld [vmem:[%s1786_s3 + $0x58] sm:$0xff]  ;;  %v769_v62 = vld [vmem:[%s1786_s3 + $0xc8] sm:$0xff]  ;;  %v770_v63 = vld [vmem:[%s1786_s3 + $0xd0] sm:$0xff] }
  0x1f   :  { %1142 = vmatprep.subr.bf16.mxu1 %v1250_v2  ;;  %v1185_v61 = vpack.c.bf16 %v297_v60, %v296_v59  ;;  %v1164_v0 = vpack.c.bf16 %v770_v63, %v769_v62  ;;  %v298_v1 = vld [vmem:[%s1786_s3 + $0x60] sm:$0xff]  ;;  %v299_v3 = vld [vmem:[%s1786_s3 + $0x68] sm:$0xff]  ;;  %v771_v5 = vld [vmem:[%s1786_s3 + $0xd8] sm:$0xff] }
  0x20   :  { %v1188_v4 = vpack.c.bf16 %v299_v3, %v298_v1  ;;  %v772_v6 = vld [vmem:[%s1786_s3 + $0xe0] sm:$0xff]  ;;  %v300_v9 = vld [vmem:[%s1786_s3 + $0x70] sm:$0xff]  ;;  %v777_v29 = vld [vmem:[%s1786_s3 + $0xf8] sm:$0xff] }
  0x21   :  { %1120 = vmatpush3.bf16.msra.mxu0 %v1119_v10  ;;  %v1167_v7 = vpack.c.bf16 %v772_v6, %v771_v5  ;;  %v773_v10 = vld [vmem:[%s1786_s3 + $0xe8] sm:$0xff]  ;;  %v754_v13 = vld [vmem:[%s1787_s2] ss:$0 sm:$0xff]  ;;  %v793_v19 = vld [vmem:[%s1786_s3 + $0x170] sm:$0xff] }
  0x22   :  { %1144 = vmatpush1.bf16.msra.mxu1 %v1143_v11  ;;  %1148 = vmatprep.subr.bf16.mxu0 %v1250_v2  ;;  %v795_v31 = vld [vmem:[%s1786_s3 + $0x180] sm:$0xff]  ;;  %v779_v41 = vld [vmem:[%s1786_s3 + $0x108] sm:$0xff]  ;;  %v797_v43 = vld [vmem:[%s1786_s3 + $0x190] sm:$0xff] }
  0x23   :  { %1145 = vmatprep.subr.bf16.mxu1 %v1250_v2  ;;  %v796_v42 = vld [vmem:[%s1786_s3 + $0x188] sm:$0xff]  ;;  %v781_v54 = vld [vmem:[%s1786_s3 + $0x118] sm:$0xff]  ;;  %v799_v56 = vld [vmem:[%s1786_s3 + $0x1a0] sm:$0xff] }
  0x24   :  { %177 = vmatmul.mubr.f32.vlgmr.msra.gmra.mrb[0].mxu0 %v26_v16  ;;  %v1218_v53 = vpack.c.bf16 %v797_v43, %v796_v42  ;;  %v782_v62 = vld [vmem:[%s1786_s3 + $0x120] sm:$0xff]  ;;  %v800_v1 = vld [vmem:[%s1786_s3 + $0x1a8] sm:$0xff]  ;;  %v801_v3 = vld [vmem:[%s1786_s3 + $0x1b0] sm:$0xff] }
  0x25   :  { %181 = vmatprep.mubr.f32.mxu0 %v31_v18  ;;  %1150 = vmatpush3.bf16.msra.mxu0 %v1149_v20  ;;  %v792_v18 = vld [vmem:[%s1786_s3 + $0x168] sm:$0xff]  ;;  %v784_v5 = vld [vmem:[%s1786_s3 + $0x130] sm:$0xff]  ;;  %v1224_v6 = vpack.c.bf16 %v801_v3, %v800_v1 }
  0x26   :  { %1147 = vmatpush1.bf16.msra.mxu1 %v1146_v17  ;;  %1151 = vmatprep.subr.bf16.mxu0 %v1250_v2 }
  0x27   :  { %1169 = vmatprep.subr.bf16.mxu1 %v1250_v2 }
  0x28   :  { %182 = vmatmul.mubr.f32.gmra.mrb[2].mxu0 %v30_v24  ;;  %v776_v24 = vld [vmem:[%s1786_s3 + $0xf0] sm:$0xff] }
  0x29   :  { %262 = vmatmul.mubr.f32.vlgmr.msra.gmra.mrb[0].mxu1 %v28_v25  ;;  %186 = vmatprep.mubr.f32.mxu0 %v35_v27  ;;  %v1212_v25 = vpack.c.bf16 %v793_v19, %v792_v18  ;;  %v788_v19 = vld [vmem:[%s1786_s3 + $0x150] sm:$0xff] }
  0x2a   :  { %756 = vmatprep.mubr.msk.f32.mxu1 %vm99_vm0, %v33_v26  ;;  %1171 = vmatpush3.bf16.msra.mxu1 %v1170_v28 }
  0x2b   :  { %1153 = vmatpush3.bf16.msra.mxu0 %v1152_v30  ;;  %1172 = vmatprep.subr.bf16.mxu1 %v1250_v2  ;;  %v794_v30 = vld [vmem:[%s1786_s3 + $0x178] sm:$0xff] }
  0x2c   :  { %1154 = vmatprep.subr.bf16.mxu0 %v1250_v2  ;;  %187 = vmatmul.mubr.f32.gmra.mrb[4].mxu0 %v34_v35  ;;  %v1215_v39 = vpack.c.bf16 %v795_v31, %v794_v30  ;;  %v656_v30 = vld [vmem:[%s1788_s5 + $0x18] sm:$0xff] }
  0x2d   :  { %267 = vmatmul.mubr.f32.gmra.mrb[2].mxu1 %v32_v34  ;;  %191 = vmatprep.mubr.f32.mxu0 %v39_v36 }
  0x2e   :  { %757 = vmatprep.mubr.msk.f32.mxu1 %vm99_vm0, %v37_v37  ;;  %1174 = vmatpush3.bf16.msra.mxu1 %v1173_v38  ;;  %v1191_v37 = vpack.c.bf16 %v777_v29, %v776_v24  ;;  %v778_v38 = vld [vmem:[%s1786_s3 + $0x100] sm:$0xff] }
  0x2f   :  { %1156 = vmatpush3.bf16.msra.mxu0 %v1155_v40  ;;  %1175 = vmatprep.subr.bf16.mxu1 %v1250_v2  ;;  %v790_v24 = vld [vmem:[%s1786_s3 + $0x160] sm:$0xff] }
  0x30   :  { %1157 = vmatprep.subr.bf16.mxu0 %v1250_v2  ;;  %192 = vmatmul.mubr.f32.gmra.mrb[6].mxu0 %v38_v44 }
  0x31   :  { %272 = vmatmul.mubr.f32.gmra.mrb[4].mxu1 %v36_v45  ;;  %962 = vmatprep.mubr.msk.f32.mxu0 %vm1252_vm1, %v1251_v8 }
  0x32   :  { %758 = vmatprep.mubr.msk.f32.mxu1 %vm99_vm0, %v41_v46  ;;  %1177 = vmatpush3.bf16.msra.mxu1 %v1176_v47 }
  0x33   :  { %1159 = vmatpush3.bf16.msra.mxu0 %v1158_v48  ;;  %1178 = vmatprep.subr.bf16.mxu1 %v1250_v2 }
  0x34   :  { %1160 = vmatprep.subr.bf16.mxu0 %v1250_v2 }
  0x35   :  { %277 = vmatmul.mubr.f32.gmra.mrb[6].mxu1 %v40_v51  ;;  %v1194_v51 = vpack.c.bf16 %v779_v41, %v778_v38  ;;  %v661_v38 = vld [vmem:[%s1788_s5 + $0x40] sm:$0xff]  ;;  %v663_v41 = vld [vmem:[%s1788_s5 + $0x50] sm:$0xf] }
  0x36   :  { %1180 = vmatpush3.bf16.msra.mxu1 %v1179_v52  ;;  %995 = vmatprep.mubr.msk.f32.mxu1 %vm1252_vm1, %v1251_v8  ;;  %v780_v52 = vld [vmem:[%s1786_s3 + $0x110] sm:$0xff] }
  0x37   :  { %1181 = vmatprep.subr.bf16.mxu1 %v1250_v2  ;;  %1162 = vmatpush3.bf16.msra.mxu0 %v1161_v58 }
  0x38   :  { %1163 = vmatprep.subr.bf16.mxu0 %v1250_v2 }
  0x3a   :  { %1183 = vmatpush3.bf16.msra.mxu1 %v1182_v55  ;;  %v798_v55 = vld [vmem:[%s1786_s3 + $0x198] sm:$0xff] }
  0x3b   :  { %1184 = vmatprep.subr.bf16.mxu1 %v1250_v2  ;;  %1165 = vmatpush3.bf16.msra.mxu0 %v1164_v0  ;;  %v1221_v63 = vpack.c.bf16 %v799_v56, %v798_v55  ;;  %v783_v0 = vld [vmem:[%s1786_s3 + $0x128] sm:$0xff] }
  0x3c   :  { %1166 = vmatprep.subr.bf16.mxu0 %v1250_v2 }
  0x3e   :  { %1186 = vmatpush3.bf16.msra.mxu1 %v1185_v61  ;;  %v1197_v61 = vpack.c.bf16 %v781_v54, %v780_v52  ;;  %v809_v54 = vld [vmem:[%s1790_s6] ss:$0 sm:$0xff] }
  0x3f   :  { %1187 = vmatprep.subr.bf16.mxu1 %v1250_v2  ;;  %1168 = vmatpush3.bf16.msra.mxu0 %v1167_v7  ;;  %v785_v7 = vld [vmem:[%s1786_s3 + $0x138] sm:$0xff] }
  0x40   :  { %960 = vmatprep.subr.mxu0 %v1251_v8 }
  0x42   :  { %1189 = vmatpush3.bf16.msra.mxu1 %v1188_v4  ;;  %v1200_v4 = vpack.c.bf16 %v783_v0, %v782_v62 }
  0x43   :  { %993 = vmatprep.subr.mxu1 %v1251_v8  ;;  %961 = vmatpush3.msra.mxu0 %v773_v10  ;;  %v803_v10 = vld [vmem:[%s1786_s3 + $0x1c0] sm:$0xff] }
  0x44   :  { %1190 = vmatprep.subr.bf16.mxu0 %v1250_v2 }
  0x46   :  { %994 = vmatpush3.msra.mxu1 %v300_v9  ;;  %v802_v9 = vld [vmem:[%s1786_s3 + $0x1b8] sm:$0xff] }
  0x47   :  { %1211 = vmatprep.subr.bf16.mxu1 %v1250_v2 }
  0xf7   :  { %v844_v11 = vpop.f32.mrb[0].mxu0 }
  0xf8   :  { %v845_v12 = vpop.f32.mrb[1].mxu0 }
  0xf9   :  { %v846_v14 = vadd.f32 %v845_v12, %v844_v11  ;;  %v1203_v11 = vpack.c.bf16 %v785_v7, %v784_v5  ;;  %v786_v12 = vld [vmem:[%s1786_s3 + $0x140] sm:$0xff] }
  0xfb   :  { %v847_v15 = vpop.f32.mrb[2].mxu0  ;;  %v179_v16 = vadd.f32 %v846_v14, %v754_v13  ;;  %v787_v14 = vld [vmem:[%s1786_s3 + $0x148] sm:$0xff] }
  0xfc   :  { %v263_v17 = vpop.f32.mrb[0].mxu1  ;;  %v848_v20 = vpop.f32.mrb[3].mxu0 }
  0xfd   :  { %v265_v21 = vpop.f32.mrb[1].mxu1  ;;  %v264_v22 = vadd.f32 %v263_v17, %v179_v16  ;;  %v849_v23 = vadd.f32 %v848_v20, %v847_v15  ;;  %v804_v15 = vld [vmem:[%s1786_s3 + $0x1c8] sm:$0xff]  ;;  %v805_v16 = vld [vmem:[%s1786_s3 + $0x1d0] sm:$0xff]  ;;  %v1206_v17 = vpack.c.bf16 %v787_v14, %v786_v12  ;;  %v789_v20 = vld [vmem:[%s1786_s3 + $0x158] sm:$0xff] }
  0xfe   :  { %v1230_v18 = vpack.c.bf16 %v805_v16, %v804_v15  ;;  %v1209_v21 = vpack.c.bf16 %v789_v20, %v788_v19 }
  0xff   :  { %v282_v26 = vmax.f32 %v264_v22, 0.0  ;;  %v184_v27 = vadd.f32 %v849_v23, %v754_v13  ;;  %v850_v32 = vpop.f32.mrb[4].mxu0  ;;  %v806_v23 = vld [vmem:[%s1786_s3 + $0x1d8] sm:$0xff] }
 0x100   :  { %v268_v28 = vpop.f32.mrb[2].mxu1  ;;  %v851_v34 = vpop.f32.mrb[5].mxu0 }
 0x101   :  { %v270_v33 = vpop.f32.mrb[3].mxu1  ;;  %v269_v35 = vadd.f32 %v268_v28, %v184_v27  ;;  %996 = vmatmul.mubr.msk.f32.vlgmr.msra.gmra.mrb[8].mxu1 %vm317_vm2, %v282_v26  ;;  %v852_v36 = vadd.f32 %v851_v34, %v850_v32  ;;  %v653_v26 = vld [vmem:[%s1788_s5] sm:$0xff]  ;;  %v654_v27 = vld [vmem:[%s1788_s5 + $0x8] sm:$0xff]  ;;  %v655_v28 = vld [vmem:[%s1788_s5 + $0x10] sm:$0xff] }
 0x102   :  { %1213 = vmatpush3.bf16.msra.mxu1 %v1212_v25  ;;  %1061 = vmatprep.mubr.msk.f32.mxu1 %vm1252_vm1, %v1251_v8  ;;  %v1233_v29 = vpack.c.bf16 %v654_v27, %v653_v26  ;;  %v1236_v31 = vpack.c.bf16 %v656_v30, %v655_v28  ;;  %v657_v32 = vld [vmem:[%s1788_s5 + $0x20] sm:$0xff]  ;;  %v658_v33 = vld [vmem:[%s1788_s5 + $0x28] sm:$0xff] }
 0x103   :  { %v283_v40 = vmax.f32 %v269_v35, 0.0  ;;  %1214 = vmatprep.subr.bf16.mxu1 %v1250_v2  ;;  %v853_v44 = vpop.f32.mrb[6].mxu0  ;;  %v189_v45 = vadd.f32 %v852_v36, %v754_v13  ;;  %v1239_v34 = vpack.c.bf16 %v658_v33, %v657_v32  ;;  %v659_v35 = vld [vmem:[%s1788_s5 + $0x30] sm:$0xff]  ;;  %v660_v36 = vld [vmem:[%s1788_s5 + $0x38] sm:$0xff] }
 0x104   :  { %v273_v46 = vpop.f32.mrb[4].mxu1  ;;  %v854_v47 = vpop.f32.mrb[7].mxu0 }
 0x105   :  { %v275_v48 = vpop.f32.mrb[5].mxu1  ;;  %963 = vmatmul.mubr.msk.f32.vlgmr.msra.gmra.mrb[8].mxu0 %vm317_vm2, %v283_v40  ;;  %v855_v49 = vadd.f32 %v854_v47, %v853_v44  ;;  %v1654_v50 = vadd.f32 %v273_v46, %v189_v45 }
 0x106   :  { %1192 = vmatpush3.bf16.msra.mxu0 %v1191_v37  ;;  %1216 = vmatpush3.bf16.msra.mxu1 %v1215_v39  ;;  %v1242_v37 = vpack.c.bf16 %v660_v36, %v659_v35  ;;  %v662_v39 = vld [vmem:[%s1788_s5 + $0x48] sm:$0xff] }
 0x107   :  { %1193 = vmatprep.subr.bf16.mxu0 %v1250_v2  ;;  %1217 = vmatprep.subr.bf16.mxu1 %v1250_v2  ;;  %v194_v57 = vadd.f32 %v855_v49, %v754_v13  ;;  %v1227_v13 = vpack.c.bf16 %v803_v10, %v802_v9  ;;  %v284_v25 = vmax.f32 %v1654_v50, 0.0  ;;  %v1245_v40 = vpack.c.bf16 %v662_v39, %v661_v38 }
 0x108   :  { %v278_v58 = vpop.f32.mrb[6].mxu1  ;;  %1028 = vmatprep.mubr.msk.f32.mxu0 %vm1252_vm1, %v1251_v8 }
 0x109   :  { %v280_v59 = vpop.f32.mrb[7].mxu1  ;;  %v279_v60 = vadd.f32 %v278_v58, %v194_v57 }
 0x10a   :  { %1195 = vmatpush3.bf16.msra.mxu0 %v1194_v51  ;;  %1219 = vmatpush3.bf16.msra.mxu1 %v1218_v53 }
 0x10b   :  { %1196 = vmatprep.subr.bf16.mxu0 %v1250_v2  ;;  %1220 = vmatprep.subr.bf16.mxu1 %v1250_v2  ;;  %v285_v22 = vmax.f32 %v279_v60, 0.0 }
 0x10e   :  { %1198 = vmatpush3.bf16.msra.mxu0 %v1197_v61  ;;  %1222 = vmatpush3.bf16.msra.mxu1 %v1221_v63 }
 0x10f   :  { %1199 = vmatprep.subr.bf16.mxu0 %v1250_v2  ;;  %1223 = vmatprep.subr.bf16.mxu1 %v1250_v2 }
 0x112   :  { %1201 = vmatpush3.bf16.msra.mxu0 %v1200_v4  ;;  %1225 = vmatpush3.bf16.msra.mxu1 %v1224_v6 }
 0x113   :  { %1202 = vmatprep.subr.bf16.mxu0 %v1250_v2  ;;  %1226 = vmatprep.subr.bf16.mxu1 %v1250_v2 }
 0x116   :  { %1204 = vmatpush3.bf16.msra.mxu0 %v1203_v11  ;;  %1228 = vmatpush3.bf16.msra.mxu1 %v1227_v13 }
 0x117   :  { %1205 = vmatprep.subr.bf16.mxu0 %v1250_v2  ;;  %1229 = vmatprep.subr.bf16.mxu1 %v1250_v2 }
 0x11a   :  { %1207 = vmatpush3.bf16.msra.mxu0 %v1206_v17  ;;  %1231 = vmatpush3.bf16.msra.mxu1 %v1230_v18 }
 0x11b   :  { %1208 = vmatprep.subr.bf16.mxu0 %v1250_v2  ;;  %1059 = vmatprep.subr.mxu1 %v1251_v8 }
 0x11e   :  { %1210 = vmatpush3.bf16.msra.mxu0 %v1209_v21  ;;  %1060 = vmatpush3.msra.mxu1 %v806_v23 }
 0x11f   :  { %1026 = vmatprep.subr.mxu0 %v1251_v8  ;;  %1062 = vmatmul.mubr.msk.f32.vlgmr.msra.gmra.mrb[10].mxu1 %vm317_vm2, %v285_v22 }
 0x122   :  { %1027 = vmatpush3.msra.mxu0 %v790_v24 }
 0x123   :  { %1029 = vmatmul.mubr.msk.f32.vlgmr.msra.gmra.mrb[10].mxu0 %vm317_vm2, %v284_v25  ;;  %1232 = vmatprep.subr.bf16.mxu0 %v1250_v2 }
 0x124   :  { %1086 = vmatprep.mubr.msk.f32.mxu0 %vm1252_vm1, %v1251_v8  ;;  %1234 = vmatpush3.bf16.msra.mxu0 %v1233_v29 }
 0x125   :  { %1235 = vmatprep.subr.bf16.mxu0 %v1250_v2 }
 0x128   :  { %1237 = vmatpush3.bf16.msra.mxu0 %v1236_v31 }
 0x129   :  { %1238 = vmatprep.subr.bf16.mxu0 %v1250_v2 }
 0x12c   :  { %1240 = vmatpush3.bf16.msra.mxu0 %v1239_v34 }
 0x12d   :  { %1241 = vmatprep.subr.bf16.mxu0 %v1250_v2 }
 0x130   :  { %1243 = vmatpush3.bf16.msra.mxu0 %v1242_v37 }
 0x131   :  { %1244 = vmatprep.subr.bf16.mxu0 %v1250_v2 }
 0x134   :  { %1246 = vmatpush3.bf16.msra.mxu0 %v1245_v40 }
 0x135   :  { %1084 = vmatprep.subr.mxu0 %v1251_v8  ;;  %v808_v8 = vld [vmem:[%s1789_s4] ss:$0 sm:$0xff] }
 0x138   :  { %1085 = vmatpush3.msk.msra.mxu0 %vm675_vm3, %v663_v41 }
 0x1d4   :  { %v460_v42 = vpop.f32.mrb[8].mxu1 }
 0x1d5   :  { %v997_v2 = vpop.f32.mrb[9].mxu1 }
 0x1d8   :  { %v387_v43 = vpop.f32.mrb[8].mxu0 }
 0x1d9   :  { %v461_v44 = vadd.f32 %v460_v42, %v387_v43  ;;  %v964_v45 = vpop.f32.mrb[9].mxu0 }
 0x1f2   :  { %v639_v46 = vpop.f32.mrb[10].mxu1 }
 0x1f3   :  { %v1063_v47 = vpop.f32.mrb[11].mxu1 }
 0x1f6   :  { %v549_v48 = vpop.f32.mrb[10].mxu0 }
 0x1f7   :  { %v553_v49 = vadd.f32 %v549_v48, %v461_v44  ;;  %v1030_v50 = vpop.f32.mrb[11].mxu0 }
 0x1f9   :  { %v643_v51 = vadd.f32 %v639_v46, %v553_v49 }
 0x1fb   :  { %v651_v52 = vadd.f32 %v808_v8, %v643_v51 }
 0x1fd   :  { %v652_v53 = vmax.f32 %v651_v52, 0.0 }
 0x1ff   :  { %1087 = vmatmul.mubr.msk.f32.vlgmr.msra.gmra.mrb[12].mxu0 %vm671_vm4, %v652_v53 }
 0x2d2   :  { %v745_v55 = vpop.f32.mrb[12].mxu0 }
 0x2d3   :  { %v746_v56 = vadd.f32 %v809_v54, %v745_v55  ;;  %v1088_v57 = vpop.f32.mrb[13].mxu0 }
 0x2d5   :  { %749 = vst [vmem:[%s1791_s7] sm:$0xff] %v746_v56 }

</bundles_post_ra>
